<compile_context>
chip_gen: v5e
topology: v5e:2x2
jax: 0.10.0
libtpu: 0.0.40
codegen_flags: <defaults>
</compile_context>

<pallas_src>
import jax
import jax.numpy as jnp
from jax.experimental import pallas as pl
from jax.experimental.pallas import tpu as pltpu


# ------------------------------- fused kernel -------------------------------

def _disc_fused_kernel(x0_ref, x1_ref, x2_ref, x3_ref,
                       w1_ref, b1_ref, w2_ref, b2_ref, w3_ref, b3_ref,
                       out_ref, he_scr, ho_scr):
    """One batch tile of the whole discriminator forward.

    x{r}_ref : (TB, L2+1, C_in)  phase r (stride-4) of the padded, channels-last input
    w1_ref   : (5, C_in, H)      conv1 taps (each (C_in, H))
    b1_ref   : (1, H)
    w2_ref   : (5, H, 2H)        conv2 taps
    b2_ref   : (1, 2H)
    w3_ref   : (L2, 2H)          final Linear weight, permuted to channels-last order
    b3_ref   : (1, 1)
    out_ref  : (TB, 1)           sigmoid probabilities
    he_scr   : (TB, L2+2, H)     zero-padded even conv1 output (VMEM scratch)
    ho_scr   : (TB, L2+1, H)     zero-padded odd  conv1 output (VMEM scratch)
    """
    tb, lq, _ = x0_ref.shape
    l2 = lq - 1
    hid = b1_ref.shape[-1]

    def lrelu(v):                       # LeakyReLU(0.2): one VPU max (slope < 1)
        return jnp.maximum(v, 0.2 * v)

    def bmm(a, wb):  # (TB, T, K) x (TB, K, M) -> (TB, T, M), f32 accumulate on the MXU
        return jnp.einsum("btk,bkm->btm", a, wb,
                          preferred_element_type=jnp.float32)

    def bcast(w2d):  # replicate a (K, M) weight across the batch tile (hoisted, once)
        return jnp.broadcast_to(w2d, (tb,) + w2d.shape)

    w1 = [bcast(w1_ref[j]) for j in range(5)]
    w2 = [bcast(w2_ref[j]) for j in range(5)]

    x0 = x0_ref[...]
    x1 = x1_ref[...]
    x2 = x2_ref[...]
    x3 = x3_ref[...]

    # ---- conv1 (k=5, stride=2, pad=2) + LeakyReLU ----
    # Padded input position 4*t + r lives at phase[r][t]; conv1 output h1[t] reads
    # padded positions 2t .. 2t+4.  Splitting h1 into even (t = 2t') / odd (t = 2t'+1)
    # output phases makes every tap a contiguous slice of one input phase.
    h1_even = lrelu(bmm(x0[:, :l2, :], w1[0]) + bmm(x1[:, :l2, :], w1[1])
                    + bmm(x2[:, :l2, :], w1[2]) + bmm(x3[:, :l2, :], w1[3])
                    + bmm(x0[:, 1:, :], w1[4]) + b1_ref[...])
    h1_odd = lrelu(bmm(x2[:, :l2, :], w1[0]) + bmm(x3[:, :l2, :], w1[1])
                   + bmm(x0[:, 1:, :], w1[2]) + bmm(x1[:, 1:, :], w1[3])
                   + bmm(x2[:, 1:, :], w1[4]) + b1_ref[...])

    # ---- zero-pad conv1 outputs in VMEM (only boundary rows need clearing) ----
    zrow = jnp.zeros((tb, 1, hid), jnp.float32)
    he_scr[:, 0:1, :] = zrow
    he_scr[:, l2 + 1:l2 + 2, :] = zrow
    ho_scr[:, 0:1, :] = zrow
    he_scr[:, 1:l2 + 1, :] = h1_even
    ho_scr[:, 1:l2 + 1, :] = h1_odd
    he = he_scr[...]
    ho = ho_scr[...]

    # ---- conv2 (k=5, stride=2, pad=2) + LeakyReLU ----
    # h2[s] reads h1_pad[2s .. 2s+4] = he_pad[s], ho_pad[s], he_pad[s+1], ho_pad[s+1], he_pad[s+2]
    h2 = lrelu(bmm(he[:, 0:l2, :], w2[0]) + bmm(ho[:, 0:l2, :], w2[1])
               + bmm(he[:, 1:l2 + 1, :], w2[2]) + bmm(ho[:, 1:l2 + 1, :], w2[3])
               + bmm(he[:, 2:l2 + 2, :], w2[4]) + b2_ref[...])       # (TB, L2, 2H)

    # ---- Linear(2H*L2 -> 1) + Sigmoid as a VPU multiply + lane reduction ----
    prod = h2 * w3_ref[...][None, :, :]                              # (TB, L2, 2H)
    r = jnp.sum(prod, axis=-1)                                       # (TB, L2)  lane reduce
    logit = jnp.sum(r, axis=-1, keepdims=True) + b3_ref[...]         # (TB, 1)
    out_ref[...] = 1.0 / (1.0 + jnp.exp(-logit))


# ------------------------------ forward wrapper ------------------------------

def discriminator_forward(x, params, *, batch_tile=8):
    """x: (N, in_features, sequence_len) -> (N, 1) probabilities."""
    n, c_in, l = x.shape
    assert l % 4 == 0, "Discriminator requires sequence_len divisible by 4"
    l2 = l // 4
    hid = params["b1"].shape[0]
    hid2 = params["b2"].shape[0]

    # Host-side layout glue (one cheap pass over x; no 5x im2col inflation):
    # channels-last, pad by 2, split padded positions into 4 stride-4 phases.
    x_cl = jnp.transpose(x, (0, 2, 1))                    # (N, L, C_in)
    x_pad = jnp.pad(x_cl, ((0, 0), (2, 2), (0, 0)))       # (N, L+4, C_in)
    phases = [x_pad[:, r::4, :] for r in range(4)]        # 4 x (N, L2+1, C_in)

    tb = int(batch_tile)
    n_pad = -(-n // tb) * tb
    if n_pad != n:
        phases = [jnp.pad(p, ((0, n_pad - n), (0, 0), (0, 0))) for p in phases]

    # Weight repacking (once, tiny).
    w1 = jnp.transpose(params["w1"], (2, 1, 0))           # (5, C_in, H)
    b1 = params["b1"].reshape(1, hid)
    w2 = jnp.transpose(params["w2"], (2, 1, 0))           # (5, H, 2H)
    b2 = params["b2"].reshape(1, hid2)
    # PyTorch flatten(start_dim=1) of (N, 2H, L2) is channel-major; fold that
    # permutation into the Linear weight so it matches channels-last h2.
    w3 = params["w_last"].reshape(hid2, l2).T             # (L2, 2H)
    b3 = params["b_last"].reshape(1, 1)

    lq = l2 + 1
    phase_spec = pl.BlockSpec((tb, lq, c_in), lambda i: (i, 0, 0))
    out = pl.pallas_call(
        _disc_fused_kernel,
        out_shape=jax.ShapeDtypeStruct((n_pad, 1), jnp.float32),
        grid=(n_pad // tb,),
        in_specs=[phase_spec, phase_spec, phase_spec, phase_spec,
                  pl.BlockSpec((5, c_in, hid), lambda i: (0, 0, 0)),
                  pl.BlockSpec((1, hid), lambda i: (0, 0)),
                  pl.BlockSpec((5, hid, hid2), lambda i: (0, 0, 0)),
                  pl.BlockSpec((1, hid2), lambda i: (0, 0)),
                  pl.BlockSpec((l2, hid2), lambda i: (0, 0)),
                  pl.BlockSpec((1, 1), lambda i: (0, 0))],
        out_specs=pl.BlockSpec((tb, 1), lambda i: (i, 0)),
        scratch_shapes=[pltpu.VMEM((tb, l2 + 2, hid), jnp.float32),
                        pltpu.VMEM((tb, l2 + 1, hid), jnp.float32)],
        compiler_params=pltpu.CompilerParams(
            dimension_semantics=("parallel",)),
    )(*phases, w1, b1, w2, b2, w3, b3)
    return out[:n]


# --------------------------- params / reference ------------------------------

def init_params(key, sequence_len, in_features, hidden_dim):
    assert sequence_len % 4 == 0
    k1, k2, k3, k4, k5, k6 = jax.random.split(key, 6)
    flat_dim = hidden_dim * 2 * (sequence_len // 4)
    return {
        # PyTorch layouts: Conv1d weight (C_out, C_in, K); Linear weight (out, in).
        "w1": 0.1 * jax.random.normal(k1, (hidden_dim, in_features, 5), jnp.float32),
        "b1": 0.1 * jax.random.normal(k2, (hidden_dim,), jnp.float32),
        "w2": 0.1 * jax.random.normal(k3, (hidden_dim * 2, hidden_dim, 5), jnp.float32),
        "b2": 0.1 * jax.random.normal(k4, (hidden_dim * 2,), jnp.float32),
        "w_last": 0.1 * jax.random.normal(k5, (1, flat_dim), jnp.float32),
        "b_last": 0.1 * jax.random.normal(k6, (1,), jnp.float32),
    }


def _reference_forward(x, params):
    """Pure-JAX (XLA) reference matching the PyTorch module."""
    def conv1d(x, w, b):
        y = jax.lax.conv_general_dilated(
            x, w, window_strides=(2,), padding=[(2, 2)],
            dimension_numbers=("NCH", "OIH", "NCH"))
        return y + b[None, :, None]

    h = conv1d(x, params["w1"], params["b1"])
    h = jnp.where(h >= 0, h, 0.2 * h)
    h = conv1d(h, params["w2"], params["b2"])
    h = jnp.where(h >= 0, h, 0.2 * h)
    flat = h.reshape(h.shape[0], -1)
    logit = flat @ params["w_last"].T + params["b_last"]
    return jax.nn.sigmoid(logit)


# ----------------------------------- main ------------------------------------

if __name__ == "__main__":
    batch = 16
    in_features = 4
    sequence_len = 16
    hidden_dim = 32

    key = jax.random.PRNGKey(0)
    kx, kp = jax.random.split(key)
    x = jax.random.normal(kx, (batch, in_features, sequence_len), jnp.float32)
    params = init_params(kp, sequence_len, in_features, hidden_dim)

    out = discriminator_forward(x, params)
    jax.block_until_ready(out)
    assert out.shape == (batch, 1)
    assert bool(jnp.all((out >= 0.0) & (out <= 1.0)))

    ref = _reference_forward(x, params)
    max_err = float(jnp.max(jnp.abs(out - ref)))
    assert jnp.allclose(out, ref, atol=2e-3), f"max abs err vs reference: {max_err}"

    print("KERNEL_OK")
</pallas_src>

<mosaic_0001>
module attributes {stable_mosaic.version = 11 : i64} {
  func.func @_disc_fused_kernel(%arg0: i32, %arg1: memref<8x5x4xf32, #tpu.memory_space<vmem>>, %arg2: memref<8x5x4xf32, #tpu.memory_space<vmem>>, %arg3: memref<8x5x4xf32, #tpu.memory_space<vmem>>, %arg4: memref<8x5x4xf32, #tpu.memory_space<vmem>>, %arg5: memref<5x4x32xf32, #tpu.memory_space<vmem>>, %arg6: memref<1x32xf32, #tpu.memory_space<vmem>>, %arg7: memref<5x32x64xf32, #tpu.memory_space<vmem>>, %arg8: memref<1x64xf32, #tpu.memory_space<vmem>>, %arg9: memref<4x64xf32, #tpu.memory_space<vmem>>, %arg10: memref<1x1xf32, #tpu.memory_space<vmem>>, %arg11: memref<8x1xf32, #tpu.memory_space<vmem>>, %arg12: memref<8x6x32xf32, #tpu.memory_space<vmem>>, %arg13: memref<8x5x32xf32, #tpu.memory_space<vmem>>) attributes {dimension_semantics = [#tpu.dimension_semantics<parallel>], iteration_bounds = array<i64: 2>, scalar_prefetch = 0 : i64, scratch_operands = 2 : i64, tpu.core_type = #tpu.core_type<tc>, window_params = [{transform_indices = @transform_0, window_bounds = array<i64: 8, 5, 4>}, {transform_indices = @transform_1, window_bounds = array<i64: 8, 5, 4>}, {transform_indices = @transform_2, window_bounds = array<i64: 8, 5, 4>}, {transform_indices = @transform_3, window_bounds = array<i64: 8, 5, 4>}, {pipeline_mode = #tpu.pipeline_mode<synchronous>, transform_indices = @transform_4, window_bounds = array<i64: 5, 4, 32>}, {pipeline_mode = #tpu.pipeline_mode<synchronous>, transform_indices = @transform_5, window_bounds = array<i64: 1, 32>}, {pipeline_mode = #tpu.pipeline_mode<synchronous>, transform_indices = @transform_6, window_bounds = array<i64: 5, 32, 64>}, {pipeline_mode = #tpu.pipeline_mode<synchronous>, transform_indices = @transform_7, window_bounds = array<i64: 1, 64>}, {pipeline_mode = #tpu.pipeline_mode<synchronous>, transform_indices = @transform_8, window_bounds = array<i64: 4, 64>}, {pipeline_mode = #tpu.pipeline_mode<synchronous>, transform_indices = @transform_9, window_bounds = array<i64: 1, 1>}, {transform_indices = @transform_10, window_bounds = array<i64: 8, 1>}]} {
    %c0 = arith.constant 0 : index
    %c0_0 = arith.constant 0 : index
    %c0_1 = arith.constant 0 : index
    %0 = vector.load %arg5[%c0, %c0_0, %c0_1] : memref<5x4x32xf32, #tpu.memory_space<vmem>>, vector<1x4x32xf32>
    %1 = vector.shape_cast %0 : vector<1x4x32xf32> to vector<4x32xf32>
    %2 = vector.shape_cast %1 : vector<4x32xf32> to vector<1x4x32xf32>
    %3 = vector.broadcast %2 : vector<1x4x32xf32> to vector<8x4x32xf32>
    %c1 = arith.constant 1 : index
    %c0_2 = arith.constant 0 : index
    %c0_3 = arith.constant 0 : index
    %4 = vector.load %arg5[%c1, %c0_2, %c0_3] : memref<5x4x32xf32, #tpu.memory_space<vmem>>, vector<1x4x32xf32>
    %5 = vector.shape_cast %4 : vector<1x4x32xf32> to vector<4x32xf32>
    %6 = vector.shape_cast %5 : vector<4x32xf32> to vector<1x4x32xf32>
    %7 = vector.broadcast %6 : vector<1x4x32xf32> to vector<8x4x32xf32>
    %c2 = arith.constant 2 : index
    %c0_4 = arith.constant 0 : index
    %c0_5 = arith.constant 0 : index
    %8 = vector.load %arg5[%c2, %c0_4, %c0_5] : memref<5x4x32xf32, #tpu.memory_space<vmem>>, vector<1x4x32xf32>
    %9 = vector.shape_cast %8 : vector<1x4x32xf32> to vector<4x32xf32>
    %10 = vector.shape_cast %9 : vector<4x32xf32> to vector<1x4x32xf32>
    %11 = vector.broadcast %10 : vector<1x4x32xf32> to vector<8x4x32xf32>
    %c3 = arith.constant 3 : index
    %c0_6 = arith.constant 0 : index
    %c0_7 = arith.constant 0 : index
    %12 = vector.load %arg5[%c3, %c0_6, %c0_7] : memref<5x4x32xf32, #tpu.memory_space<vmem>>, vector<1x4x32xf32>
    %13 = vector.shape_cast %12 : vector<1x4x32xf32> to vector<4x32xf32>
    %14 = vector.shape_cast %13 : vector<4x32xf32> to vector<1x4x32xf32>
    %15 = vector.broadcast %14 : vector<1x4x32xf32> to vector<8x4x32xf32>
    %c4 = arith.constant 4 : index
    %c0_8 = arith.constant 0 : index
    %c0_9 = arith.constant 0 : index
    %16 = vector.load %arg5[%c4, %c0_8, %c0_9] : memref<5x4x32xf32, #tpu.memory_space<vmem>>, vector<1x4x32xf32>
    %17 = vector.shape_cast %16 : vector<1x4x32xf32> to vector<4x32xf32>
    %18 = vector.shape_cast %17 : vector<4x32xf32> to vector<1x4x32xf32>
    %19 = vector.broadcast %18 : vector<1x4x32xf32> to vector<8x4x32xf32>
    %c0_10 = arith.constant 0 : index
    %c0_11 = arith.constant 0 : index
    %c0_12 = arith.constant 0 : index
    %20 = vector.load %arg7[%c0_10, %c0_11, %c0_12] : memref<5x32x64xf32, #tpu.memory_space<vmem>>, vector<1x32x64xf32>
    %21 = vector.shape_cast %20 : vector<1x32x64xf32> to vector<32x64xf32>
    %22 = vector.shape_cast %21 : vector<32x64xf32> to vector<1x32x64xf32>
    %23 = vector.broadcast %22 : vector<1x32x64xf32> to vector<8x32x64xf32>
    %c1_13 = arith.constant 1 : index
    %c0_14 = arith.constant 0 : index
    %c0_15 = arith.constant 0 : index
    %24 = vector.load %arg7[%c1_13, %c0_14, %c0_15] : memref<5x32x64xf32, #tpu.memory_space<vmem>>, vector<1x32x64xf32>
    %25 = vector.shape_cast %24 : vector<1x32x64xf32> to vector<32x64xf32>
    %26 = vector.shape_cast %25 : vector<32x64xf32> to vector<1x32x64xf32>
    %27 = vector.broadcast %26 : vector<1x32x64xf32> to vector<8x32x64xf32>
    %c2_16 = arith.constant 2 : index
    %c0_17 = arith.constant 0 : index
    %c0_18 = arith.constant 0 : index
    %28 = vector.load %arg7[%c2_16, %c0_17, %c0_18] : memref<5x32x64xf32, #tpu.memory_space<vmem>>, vector<1x32x64xf32>
    %29 = vector.shape_cast %28 : vector<1x32x64xf32> to vector<32x64xf32>
    %30 = vector.shape_cast %29 : vector<32x64xf32> to vector<1x32x64xf32>
    %31 = vector.broadcast %30 : vector<1x32x64xf32> to vector<8x32x64xf32>
    %c3_19 = arith.constant 3 : index
    %c0_20 = arith.constant 0 : index
    %c0_21 = arith.constant 0 : index
    %32 = vector.load %arg7[%c3_19, %c0_20, %c0_21] : memref<5x32x64xf32, #tpu.memory_space<vmem>>, vector<1x32x64xf32>
    %33 = vector.shape_cast %32 : vector<1x32x64xf32> to vector<32x64xf32>
    %34 = vector.shape_cast %33 : vector<32x64xf32> to vector<1x32x64xf32>
    %35 = vector.broadcast %34 : vector<1x32x64xf32> to vector<8x32x64xf32>
    %c4_22 = arith.constant 4 : index
    %c0_23 = arith.constant 0 : index
    %c0_24 = arith.constant 0 : index
    %36 = vector.load %arg7[%c4_22, %c0_23, %c0_24] : memref<5x32x64xf32, #tpu.memory_space<vmem>>, vector<1x32x64xf32>
    %37 = vector.shape_cast %36 : vector<1x32x64xf32> to vector<32x64xf32>
    %38 = vector.shape_cast %37 : vector<32x64xf32> to vector<1x32x64xf32>
    %39 = vector.broadcast %38 : vector<1x32x64xf32> to vector<8x32x64xf32>
    %c0_25 = arith.constant 0 : index
    %c0_26 = arith.constant 0 : index
    %c0_27 = arith.constant 0 : index
    %40 = vector.load %arg1[%c0_25, %c0_26, %c0_27] : memref<8x5x4xf32, #tpu.memory_space<vmem>>, vector<8x5x4xf32>
    %c0_28 = arith.constant 0 : index
    %c0_29 = arith.constant 0 : index
    %c0_30 = arith.constant 0 : index
    %41 = vector.load %arg2[%c0_28, %c0_29, %c0_30] : memref<8x5x4xf32, #tpu.memory_space<vmem>>, vector<8x5x4xf32>
    %c0_31 = arith.constant 0 : index
    %c0_32 = arith.constant 0 : index
    %c0_33 = arith.constant 0 : index
    %42 = vector.load %arg3[%c0_31, %c0_32, %c0_33] : memref<8x5x4xf32, #tpu.memory_space<vmem>>, vector<8x5x4xf32>
    %c0_34 = arith.constant 0 : index
    %c0_35 = arith.constant 0 : index
    %c0_36 = arith.constant 0 : index
    %43 = vector.load %arg4[%c0_34, %c0_35, %c0_36] : memref<8x5x4xf32, #tpu.memory_space<vmem>>, vector<8x5x4xf32>
    %44 = vector.extract_strided_slice %40 {offsets = [0, 0, 0], sizes = [8, 4, 4], strides = [1, 1, 1]} : vector<8x5x4xf32> to vector<8x4x4xf32>
    "tpu.trace_start"() <{level = 10 : i32, message = "btk,bkm->btm"}> : () -> ()
    %cst = arith.constant dense<0.000000e+00> : vector<8x4x32xf32>
    %45 = tpu.matmul %44, %3, %cst {dimension_numbers = #tpu.dot_dimension_numbers<[2], [1], [1], [2], [0, 0, 0, 1, 1, 2], [0], [0]>} : vector<8x4x4xf32>, vector<8x4x32xf32>, vector<8x4x32xf32> -> vector<8x4x32xf32>
    "tpu.trace_stop"() : () -> ()
    %46 = vector.extract_strided_slice %41 {offsets = [0, 0, 0], sizes = [8, 4, 4], strides = [1, 1, 1]} : vector<8x5x4xf32> to vector<8x4x4xf32>
    "tpu.trace_start"() <{level = 10 : i32, message = "btk,bkm->btm"}> : () -> ()
    %cst_37 = arith.constant dense<0.000000e+00> : vector<8x4x32xf32>
    %47 = tpu.matmul %46, %7, %cst_37 {dimension_numbers = #tpu.dot_dimension_numbers<[2], [1], [1], [2], [0, 0, 0, 1, 1, 2], [0], [0]>} : vector<8x4x4xf32>, vector<8x4x32xf32>, vector<8x4x32xf32> -> vector<8x4x32xf32>
    "tpu.trace_stop"() : () -> ()
    %48 = arith.addf %45, %47 : vector<8x4x32xf32>
    %49 = vector.extract_strided_slice %42 {offsets = [0, 0, 0], sizes = [8, 4, 4], strides = [1, 1, 1]} : vector<8x5x4xf32> to vector<8x4x4xf32>
    "tpu.trace_start"() <{level = 10 : i32, message = "btk,bkm->btm"}> : () -> ()
    %cst_38 = arith.constant dense<0.000000e+00> : vector<8x4x32xf32>
    %50 = tpu.matmul %49, %11, %cst_38 {dimension_numbers = #tpu.dot_dimension_numbers<[2], [1], [1], [2], [0, 0, 0, 1, 1, 2], [0], [0]>} : vector<8x4x4xf32>, vector<8x4x32xf32>, vector<8x4x32xf32> -> vector<8x4x32xf32>
    "tpu.trace_stop"() : () -> ()
    %51 = arith.addf %48, %50 : vector<8x4x32xf32>
    %52 = vector.extract_strided_slice %43 {offsets = [0, 0, 0], sizes = [8, 4, 4], strides = [1, 1, 1]} : vector<8x5x4xf32> to vector<8x4x4xf32>
    "tpu.trace_start"() <{level = 10 : i32, message = "btk,bkm->btm"}> : () -> ()
    %cst_39 = arith.constant dense<0.000000e+00> : vector<8x4x32xf32>
    %53 = tpu.matmul %52, %15, %cst_39 {dimension_numbers = #tpu.dot_dimension_numbers<[2], [1], [1], [2], [0, 0, 0, 1, 1, 2], [0], [0]>} : vector<8x4x4xf32>, vector<8x4x32xf32>, vector<8x4x32xf32> -> vector<8x4x32xf32>
    "tpu.trace_stop"() : () -> ()
    %54 = arith.addf %51, %53 : vector<8x4x32xf32>
    %55 = vector.extract_strided_slice %40 {offsets = [0, 1, 0], sizes = [8, 4, 4], strides = [1, 1, 1]} : vector<8x5x4xf32> to vector<8x4x4xf32>
    "tpu.trace_start"() <{level = 10 : i32, message = "btk,bkm->btm"}> : () -> ()
    %cst_40 = arith.constant dense<0.000000e+00> : vector<8x4x32xf32>
    %56 = tpu.matmul %55, %19, %cst_40 {dimension_numbers = #tpu.dot_dimension_numbers<[2], [1], [1], [2], [0, 0, 0, 1, 1, 2], [0], [0]>} : vector<8x4x4xf32>, vector<8x4x32xf32>, vector<8x4x32xf32> -> vector<8x4x32xf32>
    "tpu.trace_stop"() : () -> ()
    %57 = arith.addf %54, %56 : vector<8x4x32xf32>
    %c0_41 = arith.constant 0 : index
    %c0_42 = arith.constant 0 : index
    %58 = vector.load %arg6[%c0_41, %c0_42] : memref<1x32xf32, #tpu.memory_space<vmem>>, vector<1x32xf32>
    %59 = vector.shape_cast %58 : vector<1x32xf32> to vector<1x1x32xf32>
    %60 = vector.broadcast %59 : vector<1x1x32xf32> to vector<8x4x32xf32>
    %61 = arith.addf %57, %60 : vector<8x4x32xf32>
    %cst_43 = arith.constant 2.000000e-01 : f32
    %62 = vector.broadcast %cst_43 : f32 to vector<8x4x32xf32>
    %63 = arith.mulf %62, %61 : vector<8x4x32xf32>
    %64 = arith.maximumf %61, %63 : vector<8x4x32xf32>
    %65 = vector.extract_strided_slice %42 {offsets = [0, 0, 0], sizes = [8, 4, 4], strides = [1, 1, 1]} : vector<8x5x4xf32> to vector<8x4x4xf32>
    "tpu.trace_start"() <{level = 10 : i32, message = "btk,bkm->btm"}> : () -> ()
    %cst_44 = arith.constant dense<0.000000e+00> : vector<8x4x32xf32>
    %66 = tpu.matmul %65, %3, %cst_44 {dimension_numbers = #tpu.dot_dimension_numbers<[2], [1], [1], [2], [0, 0, 0, 1, 1, 2], [0], [0]>} : vector<8x4x4xf32>, vector<8x4x32xf32>, vector<8x4x32xf32> -> vector<8x4x32xf32>
    "tpu.trace_stop"() : () -> ()
    %67 = vector.extract_strided_slice %43 {offsets = [0, 0, 0], sizes = [8, 4, 4], strides = [1, 1, 1]} : vector<8x5x4xf32> to vector<8x4x4xf32>
    "tpu.trace_start"() <{level = 10 : i32, message = "btk,bkm->btm"}> : () -> ()
    %cst_45 = arith.constant dense<0.000000e+00> : vector<8x4x32xf32>
    %68 = tpu.matmul %67, %7, %cst_45 {dimension_numbers = #tpu.dot_dimension_numbers<[2], [1], [1], [2], [0, 0, 0, 1, 1, 2], [0], [0]>} : vector<8x4x4xf32>, vector<8x4x32xf32>, vector<8x4x32xf32> -> vector<8x4x32xf32>
    "tpu.trace_stop"() : () -> ()
    %69 = arith.addf %66, %68 : vector<8x4x32xf32>
    %70 = vector.extract_strided_slice %40 {offsets = [0, 1, 0], sizes = [8, 4, 4], strides = [1, 1, 1]} : vector<8x5x4xf32> to vector<8x4x4xf32>
    "tpu.trace_start"() <{level = 10 : i32, message = "btk,bkm->btm"}> : () -> ()
    %cst_46 = arith.constant dense<0.000000e+00> : vector<8x4x32xf32>
    %71 = tpu.matmul %70, %11, %cst_46 {dimension_numbers = #tpu.dot_dimension_numbers<[2], [1], [1], [2], [0, 0, 0, 1, 1, 2], [0], [0]>} : vector<8x4x4xf32>, vector<8x4x32xf32>, vector<8x4x32xf32> -> vector<8x4x32xf32>
    "tpu.trace_stop"() : () -> ()
    %72 = arith.addf %69, %71 : vector<8x4x32xf32>
    %73 = vector.extract_strided_slice %41 {offsets = [0, 1, 0], sizes = [8, 4, 4], strides = [1, 1, 1]} : vector<8x5x4xf32> to vector<8x4x4xf32>
    "tpu.trace_start"() <{level = 10 : i32, message = "btk,bkm->btm"}> : () -> ()
    %cst_47 = arith.constant dense<0.000000e+00> : vector<8x4x32xf32>
    %74 = tpu.matmul %73, %15, %cst_47 {dimension_numbers = #tpu.dot_dimension_numbers<[2], [1], [1], [2], [0, 0, 0, 1, 1, 2], [0], [0]>} : vector<8x4x4xf32>, vector<8x4x32xf32>, vector<8x4x32xf32> -> vector<8x4x32xf32>
    "tpu.trace_stop"() : () -> ()
    %75 = arith.addf %72, %74 : vector<8x4x32xf32>
    %76 = vector.extract_strided_slice %42 {offsets = [0, 1, 0], sizes = [8, 4, 4], strides = [1, 1, 1]} : vector<8x5x4xf32> to vector<8x4x4xf32>
    "tpu.trace_start"() <{level = 10 : i32, message = "btk,bkm->btm"}> : () -> ()
    %cst_48 = arith.constant dense<0.000000e+00> : vector<8x4x32xf32>
    %77 = tpu.matmul %76, %19, %cst_48 {dimension_numbers = #tpu.dot_dimension_numbers<[2], [1], [1], [2], [0, 0, 0, 1, 1, 2], [0], [0]>} : vector<8x4x4xf32>, vector<8x4x32xf32>, vector<8x4x32xf32> -> vector<8x4x32xf32>
    "tpu.trace_stop"() : () -> ()
    %78 = arith.addf %75, %77 : vector<8x4x32xf32>
    %c0_49 = arith.constant 0 : index
    %c0_50 = arith.constant 0 : index
    %79 = vector.load %arg6[%c0_49, %c0_50] : memref<1x32xf32, #tpu.memory_space<vmem>>, vector<1x32xf32>
    %80 = vector.shape_cast %79 : vector<1x32xf32> to vector<1x1x32xf32>
    %81 = vector.broadcast %80 : vector<1x1x32xf32> to vector<8x4x32xf32>
    %82 = arith.addf %78, %81 : vector<8x4x32xf32>
    %cst_51 = arith.constant 2.000000e-01 : f32
    %83 = vector.broadcast %cst_51 : f32 to vector<8x4x32xf32>
    %84 = arith.mulf %83, %82 : vector<8x4x32xf32>
    %85 = arith.maximumf %82, %84 : vector<8x4x32xf32>
    %cst_52 = arith.constant 0.000000e+00 : f32
    %86 = vector.broadcast %cst_52 : f32 to vector<8x1x32xf32>
    %c0_53 = arith.constant 0 : index
    %c0_54 = arith.constant 0 : index
    %c0_55 = arith.constant 0 : index
    %87 = vector.load %arg12[%c0_53, %c0_54, %c0_55] : memref<8x6x32xf32, #tpu.memory_space<vmem>>, vector<8x1x32xf32>
    tpu.vector_store %arg12[%c0_53, %c0_54, %c0_55], %86 {strides = array<i32>} : memref<8x6x32xf32, #tpu.memory_space<vmem>>, vector<8x1x32xf32>,
    %c0_56 = arith.constant 0 : index
    %c5 = arith.constant 5 : index
    %c0_57 = arith.constant 0 : index
    %88 = vector.load %arg12[%c0_56, %c5, %c0_57] : memref<8x6x32xf32, #tpu.memory_space<vmem>>, vector<8x1x32xf32>
    tpu.vector_store %arg12[%c0_56, %c5, %c0_57], %86 {strides = array<i32>} : memref<8x6x32xf32, #tpu.memory_space<vmem>>, vector<8x1x32xf32>,
    %c0_58 = arith.constant 0 : index
    %c0_59 = arith.constant 0 : index
    %c0_60 = arith.constant 0 : index
    %89 = vector.load %arg13[%c0_58, %c0_59, %c0_60] : memref<8x5x32xf32, #tpu.memory_space<vmem>>, vector<8x1x32xf32>
    tpu.vector_store %arg13[%c0_58, %c0_59, %c0_60], %86 {strides = array<i32>} : memref<8x5x32xf32, #tpu.memory_space<vmem>>, vector<8x1x32xf32>,
    %c0_61 = arith.constant 0 : index
    %c1_62 = arith.constant 1 : index
    %c0_63 = arith.constant 0 : index
    %90 = vector.load %arg12[%c0_61, %c1_62, %c0_63] : memref<8x6x32xf32, #tpu.memory_space<vmem>>, vector<8x4x32xf32>
    tpu.vector_store %arg12[%c0_61, %c1_62, %c0_63], %64 {strides = array<i32>} : memref<8x6x32xf32, #tpu.memory_space<vmem>>, vector<8x4x32xf32>,
    %c0_64 = arith.constant 0 : index
    %c1_65 = arith.constant 1 : index
    %c0_66 = arith.constant 0 : index
    %91 = vector.load %arg13[%c0_64, %c1_65, %c0_66] : memref<8x5x32xf32, #tpu.memory_space<vmem>>, vector<8x4x32xf32>
    tpu.vector_store %arg13[%c0_64, %c1_65, %c0_66], %85 {strides = array<i32>} : memref<8x5x32xf32, #tpu.memory_space<vmem>>, vector<8x4x32xf32>,
    %c0_67 = arith.constant 0 : index
    %c0_68 = arith.constant 0 : index
    %c0_69 = arith.constant 0 : index
    %92 = vector.load %arg12[%c0_67, %c0_68, %c0_69] : memref<8x6x32xf32, #tpu.memory_space<vmem>>, vector<8x6x32xf32>
    %c0_70 = arith.constant 0 : index
    %c0_71 = arith.constant 0 : index
    %c0_72 = arith.constant 0 : index
    %93 = vector.load %arg13[%c0_70, %c0_71, %c0_72] : memref<8x5x32xf32, #tpu.memory_space<vmem>>, vector<8x5x32xf32>
    %94 = vector.extract_strided_slice %92 {offsets = [0, 0, 0], sizes = [8, 4, 32], strides = [1, 1, 1]} : vector<8x6x32xf32> to vector<8x4x32xf32>
    "tpu.trace_start"() <{level = 10 : i32, message = "btk,bkm->btm"}> : () -> ()
    %cst_73 = arith.constant dense<0.000000e+00> : vector<8x4x64xf32>
    %95 = tpu.matmul %94, %23, %cst_73 {dimension_numbers = #tpu.dot_dimension_numbers<[2], [1], [1], [2], [0, 0, 0, 1, 1, 2], [0], [0]>} : vector<8x4x32xf32>, vector<8x32x64xf32>, vector<8x4x64xf32> -> vector<8x4x64xf32>
    "tpu.trace_stop"() : () -> ()
    %96 = vector.extract_strided_slice %93 {offsets = [0, 0, 0], sizes = [8, 4, 32], strides = [1, 1, 1]} : vector<8x5x32xf32> to vector<8x4x32xf32>
    "tpu.trace_start"() <{level = 10 : i32, message = "btk,bkm->btm"}> : () -> ()
    %cst_74 = arith.constant dense<0.000000e+00> : vector<8x4x64xf32>
    %97 = tpu.matmul %96, %27, %cst_74 {dimension_numbers = #tpu.dot_dimension_numbers<[2], [1], [1], [2], [0, 0, 0, 1, 1, 2], [0], [0]>} : vector<8x4x32xf32>, vector<8x32x64xf32>, vector<8x4x64xf32> -> vector<8x4x64xf32>
    "tpu.trace_stop"() : () -> ()
    %98 = arith.addf %95, %97 : vector<8x4x64xf32>
    %99 = vector.extract_strided_slice %92 {offsets = [0, 1, 0], sizes = [8, 4, 32], strides = [1, 1, 1]} : vector<8x6x32xf32> to vector<8x4x32xf32>
    "tpu.trace_start"() <{level = 10 : i32, message = "btk,bkm->btm"}> : () -> ()
    %cst_75 = arith.constant dense<0.000000e+00> : vector<8x4x64xf32>
    %100 = tpu.matmul %99, %31, %cst_75 {dimension_numbers = #tpu.dot_dimension_numbers<[2], [1], [1], [2], [0, 0, 0, 1, 1, 2], [0], [0]>} : vector<8x4x32xf32>, vector<8x32x64xf32>, vector<8x4x64xf32> -> vector<8x4x64xf32>
    "tpu.trace_stop"() : () -> ()
    %101 = arith.addf %98, %100 : vector<8x4x64xf32>
    %102 = vector.extract_strided_slice %93 {offsets = [0, 1, 0], sizes = [8, 4, 32], strides = [1, 1, 1]} : vector<8x5x32xf32> to vector<8x4x32xf32>
    "tpu.trace_start"() <{level = 10 : i32, message = "btk,bkm->btm"}> : () -> ()
    %cst_76 = arith.constant dense<0.000000e+00> : vector<8x4x64xf32>
    %103 = tpu.matmul %102, %35, %cst_76 {dimension_numbers = #tpu.dot_dimension_numbers<[2], [1], [1], [2], [0, 0, 0, 1, 1, 2], [0], [0]>} : vector<8x4x32xf32>, vector<8x32x64xf32>, vector<8x4x64xf32> -> vector<8x4x64xf32>
    "tpu.trace_stop"() : () -> ()
    %104 = arith.addf %101, %103 : vector<8x4x64xf32>
    %105 = vector.extract_strided_slice %92 {offsets = [0, 2, 0], sizes = [8, 4, 32], strides = [1, 1, 1]} : vector<8x6x32xf32> to vector<8x4x32xf32>
    "tpu.trace_start"() <{level = 10 : i32, message = "btk,bkm->btm"}> : () -> ()
    %cst_77 = arith.constant dense<0.000000e+00> : vector<8x4x64xf32>
    %106 = tpu.matmul %105, %39, %cst_77 {dimension_numbers = #tpu.dot_dimension_numbers<[2], [1], [1], [2], [0, 0, 0, 1, 1, 2], [0], [0]>} : vector<8x4x32xf32>, vector<8x32x64xf32>, vector<8x4x64xf32> -> vector<8x4x64xf32>
    "tpu.trace_stop"() : () -> ()
    %107 = arith.addf %104, %106 : vector<8x4x64xf32>
    %c0_78 = arith.constant 0 : index
    %c0_79 = arith.constant 0 : index
    %108 = vector.load %arg8[%c0_78, %c0_79] : memref<1x64xf32, #tpu.memory_space<vmem>>, vector<1x64xf32>
    %109 = vector.shape_cast %108 : vector<1x64xf32> to vector<1x1x64xf32>
    %110 = vector.broadcast %109 : vector<1x1x64xf32> to vector<8x4x64xf32>
    %111 = arith.addf %107, %110 : vector<8x4x64xf32>
    %cst_80 = arith.constant 2.000000e-01 : f32
    %112 = vector.broadcast %cst_80 : f32 to vector<8x4x64xf32>
    %113 = arith.mulf %112, %111 : vector<8x4x64xf32>
    %114 = arith.maximumf %111, %113 : vector<8x4x64xf32>
    %c0_81 = arith.constant 0 : index
    %c0_82 = arith.constant 0 : index
    %115 = vector.load %arg9[%c0_81, %c0_82] : memref<4x64xf32, #tpu.memory_space<vmem>>, vector<4x64xf32>
    %116 = vector.shape_cast %115 : vector<4x64xf32> to vector<1x4x64xf32>
    %117 = vector.broadcast %116 : vector<1x4x64xf32> to vector<8x4x64xf32>
    %118 = arith.mulf %114, %117 : vector<8x4x64xf32>
    %cst_83 = arith.constant dense<0.000000e+00> : vector<8x4xf32>
    %119 = vector.multi_reduction <add>, %118, %cst_83 [2] : vector<8x4x64xf32> to vector<8x4xf32>
    %cst_84 = arith.constant dense<0.000000e+00> : vector<8xf32>
    %120 = vector.multi_reduction <add>, %119, %cst_84 [1] : vector<8x4xf32> to vector<8xf32>
    %121 = vector.shape_cast %120 : vector<8xf32> to vector<8x1xf32>
    %c0_85 = arith.constant 0 : index
    %c0_86 = arith.constant 0 : index
    %122 = vector.load %arg10[%c0_85, %c0_86] : memref<1x1xf32, #tpu.memory_space<vmem>>, vector<1x1xf32>
    %123 = vector.broadcast %122 : vector<1x1xf32> to vector<8x1xf32>
    %124 = arith.addf %121, %123 : vector<8x1xf32>
    %cst_87 = arith.constant 0.000000e+00 : f32
    %125 = vector.broadcast %cst_87 : f32 to vector<8x1xf32>
    %126 = arith.subf %125, %124 : vector<8x1xf32>
    %127 = math.exp %126 : vector<8x1xf32>
    %cst_88 = arith.constant 1.000000e+00 : f32
    %128 = vector.broadcast %cst_88 : f32 to vector<8x1xf32>
    %129 = arith.addf %128, %127 : vector<8x1xf32>
    %cst_89 = arith.constant 1.000000e+00 : f32
    %130 = vector.broadcast %cst_89 : f32 to vector<8x1xf32>
    %131 = arith.divf %130, %129 : vector<8x1xf32>
    %c0_90 = arith.constant 0 : index
    %c0_91 = arith.constant 0 : index
    %132 = vector.load %arg11[%c0_90, %c0_91] : memref<8x1xf32, #tpu.memory_space<vmem>>, vector<8x1xf32>
    tpu.vector_store %arg11[%c0_90, %c0_91], %131 {strides = array<i32>} : memref<8x1xf32, #tpu.memory_space<vmem>>, vector<8x1xf32>,
    return
  }
  func.func @transform_0(%arg0: i32) -> (i32, i32, i32) {
    %c0_i32 = arith.constant 0 : i32
    %c0_i32_0 = arith.constant 0 : i32
    %c0_i32_1 = arith.constant 0 : i32
    return %arg0, %c0_i32, %c0_i32_0 : i32, i32, i32
  }
  func.func @transform_1(%arg0: i32) -> (i32, i32, i32) {
    %c0_i32 = arith.constant 0 : i32
    %c0_i32_0 = arith.constant 0 : i32
    %c0_i32_1 = arith.constant 0 : i32
    return %arg0, %c0_i32, %c0_i32_0 : i32, i32, i32
  }
  func.func @transform_2(%arg0: i32) -> (i32, i32, i32) {
    %c0_i32 = arith.constant 0 : i32
    %c0_i32_0 = arith.constant 0 : i32
    %c0_i32_1 = arith.constant 0 : i32
    return %arg0, %c0_i32, %c0_i32_0 : i32, i32, i32
  }
  func.func @transform_3(%arg0: i32) -> (i32, i32, i32) {
    %c0_i32 = arith.constant 0 : i32
    %c0_i32_0 = arith.constant 0 : i32
    %c0_i32_1 = arith.constant 0 : i32
    return %arg0, %c0_i32, %c0_i32_0 : i32, i32, i32
  }
  func.func @transform_4(%arg0: i32) -> (i32, i32, i32) {
    %c0_i32 = arith.constant 0 : i32
    %c0_i32_0 = arith.constant 0 : i32
    %c0_i32_1 = arith.constant 0 : i32
    %c0_i32_2 = arith.constant 0 : i32
    return %c0_i32, %c0_i32_0, %c0_i32_1 : i32, i32, i32
  }
  func.func @transform_5(%arg0: i32) -> (i32, i32) {
    %c0_i32 = arith.constant 0 : i32
    %c0_i32_0 = arith.constant 0 : i32
    %c0_i32_1 = arith.constant 0 : i32
    return %c0_i32, %c0_i32_0 : i32, i32
  }
  func.func @transform_6(%arg0: i32) -> (i32, i32, i32) {
    %c0_i32 = arith.constant 0 : i32
    %c0_i32_0 = arith.constant 0 : i32
    %c0_i32_1 = arith.constant 0 : i32
    %c0_i32_2 = arith.constant 0 : i32
    return %c0_i32, %c0_i32_0, %c0_i32_1 : i32, i32, i32
  }
  func.func @transform_7(%arg0: i32) -> (i32, i32) {
    %c0_i32 = arith.constant 0 : i32
    %c0_i32_0 = arith.constant 0 : i32
    %c0_i32_1 = arith.constant 0 : i32
    return %c0_i32, %c0_i32_0 : i32, i32
  }
  func.func @transform_8(%arg0: i32) -> (i32, i32) {
    %c0_i32 = arith.constant 0 : i32
    %c0_i32_0 = arith.constant 0 : i32
    %c0_i32_1 = arith.constant 0 : i32
    return %c0_i32, %c0_i32_0 : i32, i32
  }
  func.func @transform_9(%arg0: i32) -> (i32, i32) {
    %c0_i32 = arith.constant 0 : i32
    %c0_i32_0 = arith.constant 0 : i32
    %c0_i32_1 = arith.constant 0 : i32
    return %c0_i32, %c0_i32_0 : i32, i32
  }
  func.func @transform_10(%arg0: i32) -> (i32, i32) {
    %c0_i32 = arith.constant 0 : i32
    %c0_i32_0 = arith.constant 0 : i32
    return %arg0, %c0_i32 : i32, i32
  }
}

</mosaic_0001>

<bundles_post_ra>
// kernel: tpu_custom_call.1
= control target key start
LH: loop header
LB: loop body
LE: loop exit
PB: predicated region body
PF: predicated region fallthrough
CT: control target
= control target key end

     0   :  { %s3918_s15 = smov 0   ;;  %s4717_s0 = inlined_call_operand.vmem [shape: f32[16,5,4], index: 0, kind: input, shape index: {}]   ;;  %s4718_s1 = inlined_call_operand.vmem [shape: f32[16,5,4], index: 1, kind: input, shape index: {}]   ;;  %s4719_s2 = inlined_call_operand.vmem [shape: f32[16,5,4], index: 2, kind: input, shape index: {}]   ;;  %s4720_s3 = inlined_call_operand.vmem [shape: f32[16,5,4], index: 3, kind: input, shape index: {}]   ;;  %s4721_s4 = inlined_call_operand.vmem [shape: f32[5,4,32], index: 4, kind: input, shape index: {}]   ;;  %s4722_s5 = inlined_call_operand.vmem [shape: f32[1,32], index: 5, kind: input, shape index: {}]   ;;  %s4723_s6 = inlined_call_operand.vmem [shape: f32[5,32,64], index: 6, kind: input, shape index: {}]   ;;  %s4724_s7 = inlined_call_operand.vmem [shape: f32[1,64], index: 7, kind: input, shape index: {}]   ;;  %s4725_s8 = inlined_call_operand.vmem [shape: f32[4,64], index: 8, kind: input, shape index: {}]   ;;  %s4726_s9 = inlined_call_operand.<no memory space> [shape: f32[1,1], index: 9, kind: input, shape index: {}]   ;;  %s4727_s10 = inlined_call_operand.vmem [shape: f32[16,1], index: 10, kind: output, shape index: {}]  }
   0x1   :  { %v15_v0 = vstv %s4726_s9 }
   0x2   :  { %16 = vst [vmem:[#allocation4] sm:$0x1] %v15_v0 }
   0x3 LB: > { %s3924_s16 = sadd.s32 4294967295, %s3857_s15   ;;  %p3602_p0 = scmp.ge.s32.totalorder %s3857_s15, 1  ;;  %s3857_s15 = sphi %s3918_s15, %s22_s15  }
   0x4   : > { %p348_p1 = scmp.lt.s32.totalorder %s3857_s15, 3 }
   0x6   : > { %p349_p2 = pnand %p3602_p0, %p348_p1 }
   0x7   : > { %s3603_s9 = sshll.u32 (!%p349_p2), %s3924_s16, 3  ;;  %p424_p4 = scmp.lt.s32.totalorder (!%p349_p2), %s3924_s16, 1 }
   0x8   : > { %352 = sbr.rel (%p349_p2) target bundleno = 811 (0x32b), region = 60  ;;  %p401_p3 = scmp.lt.s32.totalorder (!%p349_p2), %s3603_s9, 15 }
   0xd   : > { %v3931_v1 = vld [vmem:[%s4721_s4 + $0x4] sm:$0xf]  ;;  %vm497_vm0 = vcmask 1043456   ;;  %s4729_s9 = smov (!%p401_p3, %s3603_s9), 15  ;;  %vm493_vm1 = vcmask 31744   ;;  %vm2382_vm2 = vcmask 253952  }
   0xe   : > { %3632 = vmatpush.msk.msra.mxu0 %vm497_vm0, %v3931_v1  ;;  %3634 = vmatpush.msk.msra.mxu1 %vm497_vm0, %v3931_v1  ;;  %s3950_s19 = sshll.u32 %s4729_s9, 3  ;;  %v3959_v2 = vld [vmem:[%s4721_s4] sm:$0xf]  ;;  %v4024_v15 = vld [vmem:[%s4721_s4 + $0x8] sm:$0xf]  ;;  %vm2407_vm3 = vcmask 257024  }
   0xf   : > { %3636 = vmatpush.msk.msra.mxu2 %vm497_vm0, %v3931_v1  ;;  %3638 = vmatpush.msk.msra.mxu3 %vm497_vm0, %v3931_v1  ;;  %s410_s22 = scalar_lea.vmem %s4718_s1, %s3950_s19  ;;  %s404_s27 = scalar_lea.vmem %s4717_s0, %s3950_s19  ;;  %v4081_v24 = vld [vmem:[%s4721_s4 + $0xc] sm:$0xf]  ;;  %v4130_v33 = vld [vmem:[%s4721_s4 + $0x10] sm:$0xf]  ;;  %vm2440_vm4 = vcmask 261120   ;;  %vm3422_vm5 = vcmask 519168  }
  0x10   : > { %3640 = vmatpush.msk.msrb.mxu0 %vm497_vm0, %v3931_v1  ;;  %3642 = vmatpush.msk.msrb.mxu1 %vm497_vm0, %v3931_v1  ;;  %v3961_v3 = vld [vmem:[%s410_s22] sm:$0x1f]  ;;  %v3963_v4 = vld [vmem:[%s410_s22 + $0x8] sm:$0x1f]  ;;  %v3965_v5 = vld [vmem:[%s410_s22 + $0x10] sm:$0x1f]  ;;  %s416_s12 = scalar_lea.vmem %s4719_s2, %s3950_s19  ;;  %s422_s9 = scalar_lea.vmem %s4720_s3, %s3950_s19 }
  0x11   : > { %3644 = vmatpush.msk.msrb.mxu2 %vm497_vm0, %v3931_v1  ;;  %3646 = vmatpush.msk.msrb.mxu3 %vm497_vm0, %v3931_v1  ;;  %v3971_v6 = vld [vmem:[%s410_s22 + $0x18] sm:$0x1f]  ;;  %v3985_v7 = vld [vmem:[%s410_s22 + $0x20] sm:$0x1f]  ;;  %v3987_v8 = vld [vmem:[%s410_s22 + $0x28] sm:$0x1f] }
  0x12   : > { %3633 = vmatmul.msk.f32.vlgmr.msra.gmra.mxu0 %vm493_vm1, %v3961_v3  ;;  %3635 = vmatmul.msk.f32.vlgmr.msra.gmra.mxu1 %vm493_vm1, %v3963_v4  ;;  %v3989_v9 = vld [vmem:[%s410_s22 + $0x30] sm:$0x1f]  ;;  %v3991_v10 = vld [vmem:[%s410_s22 + $0x38] sm:$0x1f]  ;;  %v4013_v11 = vld [vmem:[%s404_s27] sm:$0x1f] }
  0x13   : > { %3637 = vmatmul.msk.f32.vlgmr.msra.gmra.mxu2 %vm493_vm1, %v3965_v5  ;;  %3639 = vmatmul.msk.f32.vlgmr.msra.gmra.mxu3 %vm493_vm1, %v3971_v6  ;;  %v4015_v12 = vld [vmem:[%s404_s27 + $0x8] sm:$0x1f]  ;;  %v4017_v13 = vld [vmem:[%s404_s27 + $0x10] sm:$0x1f]  ;;  %v4019_v14 = vld [vmem:[%s404_s27 + $0x18] sm:$0x1f] }
  0x14   : > { %3652 = vmatpush.msk.msra.mxu2 %vm497_vm0, %v3959_v2  ;;  %3648 = vmatpush.msk.msra.mxu0 %vm497_vm0, %v3959_v2  ;;  %v4042_v16 = vld [vmem:[%s404_s27 + $0x20] sm:$0x1f]  ;;  %v4044_v17 = vld [vmem:[%s404_s27 + $0x28] sm:$0x1f]  ;;  %v4046_v18 = vld [vmem:[%s404_s27 + $0x30] sm:$0x1f] }
  0x15   : > { %3650 = vmatpush.msk.msra.mxu1 %vm497_vm0, %v3959_v2  ;;  %3654 = vmatpush.msk.msra.mxu3 %vm497_vm0, %v3959_v2  ;;  %v4048_v19 = vld [vmem:[%s404_s27 + $0x38] sm:$0x1f]  ;;  %v4070_v20 = vld [vmem:[%s416_s12] sm:$0x1f]  ;;  %v4072_v21 = vld [vmem:[%s416_s12 + $0x8] sm:$0x1f] }
  0x16   : > { %v4074_v22 = vld [vmem:[%s416_s12 + $0x10] sm:$0x1f]  ;;  %v4076_v23 = vld [vmem:[%s416_s12 + $0x18] sm:$0x1f]  ;;  %v4099_v25 = vld [vmem:[%s416_s12 + $0x20] sm:$0x1f] }
  0x17   : > { %v4101_v26 = vld [vmem:[%s416_s12 + $0x28] sm:$0x1f]  ;;  %v4103_v27 = vld [vmem:[%s416_s12 + $0x30] sm:$0x1f]  ;;  %v4105_v28 = vld [vmem:[%s416_s12 + $0x38] sm:$0x1f] }
  0x18   : > { %v485_v29 = vld [vmem:[%s422_s9] sm:$0x1f]  ;;  %v486_v30 = vld [vmem:[%s422_s9 + $0x8] sm:$0x1f]  ;;  %v487_v31 = vld [vmem:[%s422_s9 + $0x10] sm:$0x1f] }
  0x19   : > { %v488_v32 = vld [vmem:[%s422_s9 + $0x18] sm:$0x1f]  ;;  %v489_v34 = vld [vmem:[%s422_s9 + $0x20] sm:$0x1f]  ;;  %v490_v35 = vld [vmem:[%s422_s9 + $0x28] sm:$0x1f] }
  0x1a   : > { %3641 = vmatmul.msk.f32.vlgmr.msrb.gmra.mxu0 %vm493_vm1, %v3985_v7  ;;  %3643 = vmatmul.msk.f32.vlgmr.msrb.gmra.mxu1 %vm493_vm1, %v3987_v8  ;;  %v491_v36 = vld [vmem:[%s422_s9 + $0x30] sm:$0x1f]  ;;  %v492_v37 = vld [vmem:[%s422_s9 + $0x38] sm:$0x1f]  ;;  %v1259_v38 = vrot.slane %v4013_v11, 1  ;;  %v1285_v39 = vrot.slane %v4015_v12, 1 }
  0x1b   : > { %3645 = vmatmul.msk.f32.vlgmr.msrb.gmra.mxu2 %vm493_vm1, %v3989_v9  ;;  %3647 = vmatmul.msk.f32.vlgmr.msrb.gmra.mxu3 %vm493_vm1, %v3991_v10  ;;  %v1308_v40 = vrot.slane %v4017_v13, 1  ;;  %v1331_v41 = vrot.slane %v4019_v14, 1  ;;  %v1354_v42 = vrot.slane %v4042_v16, 1  ;;  %v1377_v43 = vrot.slane %v4044_v17, 1  ;;  %s4731_s16 = smov (!%p424_p4, %s3924_s16), 1 }
  0x1c   : > { %3660 = vmatpush.msk.msrb.mxu2 %vm497_vm0, %v3959_v2  ;;  %3656 = vmatpush.msk.msrb.mxu0 %vm497_vm0, %v3959_v2  ;;  %v1400_v44 = vrot.slane %v4046_v18, 1  ;;  %v1423_v45 = vrot.slane %v4048_v19, 1  ;;  %v1970_v46 = vrot.slane %v3961_v3, 1  ;;  %v1993_v47 = vrot.slane %v3963_v4, 1  ;;  %s3611_s11 = sshll.u32 %s4731_s16, 3 }
  0x1d   : > { %3658 = vmatpush.msk.msrb.mxu1 %vm497_vm0, %v3959_v2  ;;  %3662 = vmatpush.msk.msrb.mxu3 %vm497_vm0, %v3959_v2  ;;  %v2016_v48 = vrot.slane %v3965_v5, 1  ;;  %v2039_v49 = vrot.slane %v3971_v6, 1  ;;  %v2062_v52 = vrot.slane %v3985_v7, 1  ;;  %v2085_v53 = vrot.slane %v3987_v8, 1  ;;  %s427_s14 = scalar_lea.vmem %s4727_s10, %s3611_s11 }
  0x1e   : > { %v2108_v56 = vrot.slane %v3989_v9, 1  ;;  %v2131_v57 = vrot.slane %v3991_v10, 1  ;;  %v2162_v60 = vrot.slane %v4070_v20, 1  ;;  %v2185_v61 = vrot.slane %v4072_v21, 1 }
  0x1f   : > { %v2208_v0 = vrot.slane %v4074_v22, 1  ;;  %v2254_v4 = vrot.slane %v4099_v25, 1  ;;  %v2277_v5 = vrot.slane %v4101_v26, 1  ;;  %v2300_v8 = vrot.slane %v4103_v27, 1 }
  0x20   : > { %v2323_v9 = vrot.slane %v4105_v28, 1  ;;  %vm3465_vm6 = vcmask 1041409   ;;  %vm3467_vm7 = vcmask 1042434   ;;  %vm3469_vm8 = vcmask 1043459  }
  0x21   : > { %vm3471_vm9 = vcmask 1044484   ;;  %vm3473_vm10 = vcmask 1045509   ;;  %vm3475_vm11 = vcmask 1046534   ;;  %vm3477_vm12 = vcmask 1047559  }
  0x22   : > { %3649 = vmatmul.msk.f32.vlgmr.msra.gmra.mxu0 %vm493_vm1, %v4013_v11  ;;  %3651 = vmatmul.msk.f32.vlgmr.msra.gmra.mxu1 %vm493_vm1, %v4015_v12  ;;  %vm3507_vm15 = vcmask 7168  }
  0x23   : > { %3653 = vmatmul.msk.f32.vlgmr.msra.gmra.mxu2 %vm493_vm1, %v4017_v13  ;;  %3655 = vmatmul.msk.f32.vlgmr.msra.gmra.mxu3 %vm493_vm1, %v4019_v14 }
  0x24   : > { %3668 = vmatpush.msk.msra.mxu2 %vm497_vm0, %v4024_v15  ;;  %3664 = vmatpush.msk.msra.mxu0 %vm497_vm0, %v4024_v15 }
  0x25   : > { %3666 = vmatpush.msk.msra.mxu1 %vm497_vm0, %v4024_v15  ;;  %3670 = vmatpush.msk.msra.mxu3 %vm497_vm0, %v4024_v15 }
  0x2a   : > { %3657 = vmatmul.msk.f32.vlgmr.msrb.gmra.mxu0 %vm493_vm1, %v4042_v16  ;;  %3659 = vmatmul.msk.f32.vlgmr.msrb.gmra.mxu1 %vm493_vm1, %v4044_v17 }
  0x2b   : > { %3661 = vmatmul.msk.f32.vlgmr.msrb.gmra.mxu2 %vm493_vm1, %v4046_v18  ;;  %3663 = vmatmul.msk.f32.vlgmr.msrb.gmra.mxu3 %vm493_vm1, %v4048_v19 }
  0x2c   : > { %3676 = vmatpush.msk.msrb.mxu2 %vm497_vm0, %v4024_v15  ;;  %3672 = vmatpush.msk.msrb.mxu0 %vm497_vm0, %v4024_v15 }
  0x2d   : > { %3674 = vmatpush.msk.msrb.mxu1 %vm497_vm0, %v4024_v15  ;;  %3678 = vmatpush.msk.msrb.mxu3 %vm497_vm0, %v4024_v15 }
  0x32   : > { %3665 = vmatmul.msk.f32.vlgmr.msra.gmra.mxu0 %vm493_vm1, %v4070_v20  ;;  %3667 = vmatmul.msk.f32.vlgmr.msra.gmra.mxu1 %vm493_vm1, %v4072_v21 }
  0x33   : > { %3669 = vmatmul.msk.f32.vlgmr.msra.gmra.mxu2 %vm493_vm1, %v4074_v22  ;;  %3671 = vmatmul.msk.f32.vlgmr.msra.gmra.mxu3 %vm493_vm1, %v4076_v23 }
  0x34   : > { %3684 = vmatpush.msk.msra.mxu2 %vm497_vm0, %v4081_v24  ;;  %3680 = vmatpush.msk.msra.mxu0 %vm497_vm0, %v4081_v24 }
  0x35   : > { %3682 = vmatpush.msk.msra.mxu1 %vm497_vm0, %v4081_v24  ;;  %3686 = vmatpush.msk.msra.mxu3 %vm497_vm0, %v4081_v24 }
  0x3a   : > { %3673 = vmatmul.msk.f32.vlgmr.msrb.gmra.mxu0 %vm493_vm1, %v4099_v25  ;;  %3675 = vmatmul.msk.f32.vlgmr.msrb.gmra.mxu1 %vm493_vm1, %v4101_v26 }
  0x3b   : > { %3677 = vmatmul.msk.f32.vlgmr.msrb.gmra.mxu2 %vm493_vm1, %v4103_v27  ;;  %3679 = vmatmul.msk.f32.vlgmr.msrb.gmra.mxu3 %vm493_vm1, %v4105_v28 }
  0x3c   : > { %3692 = vmatpush.msk.msrb.mxu2 %vm497_vm0, %v4081_v24  ;;  %3688 = vmatpush.msk.msrb.mxu0 %vm497_vm0, %v4081_v24 }
  0x3d   : > { %3690 = vmatpush.msk.msrb.mxu1 %vm497_vm0, %v4081_v24  ;;  %3694 = vmatpush.msk.msrb.mxu3 %vm497_vm0, %v4081_v24 }
  0x42   : > { %3681 = vmatmul.msk.f32.vlgmr.msra.gmra.mxu0 %vm493_vm1, %v485_v29  ;;  %3683 = vmatmul.msk.f32.vlgmr.msra.gmra.mxu1 %vm493_vm1, %v486_v30 }
  0x43   : > { %3685 = vmatmul.msk.f32.vlgmr.msra.gmra.mxu2 %vm493_vm1, %v487_v31  ;;  %3687 = vmatmul.msk.f32.vlgmr.msra.gmra.mxu3 %vm493_vm1, %v488_v32 }
  0x44   : > { %3700 = vmatpush.msk.msra.mxu2 %vm497_vm0, %v4130_v33  ;;  %3696 = vmatpush.msk.msra.mxu0 %vm497_vm0, %v4130_v33 }
  0x45   : > { %3698 = vmatpush.msk.msra.mxu1 %vm497_vm0, %v4130_v33  ;;  %3702 = vmatpush.msk.msra.mxu3 %vm497_vm0, %v4130_v33 }
  0x4a   : > { %3689 = vmatmul.msk.f32.vlgmr.msrb.gmra.mxu0 %vm493_vm1, %v489_v34  ;;  %3691 = vmatmul.msk.f32.vlgmr.msrb.gmra.mxu1 %vm493_vm1, %v490_v35 }
  0x4b   : > { %3693 = vmatmul.msk.f32.vlgmr.msrb.gmra.mxu2 %vm493_vm1, %v491_v36  ;;  %3695 = vmatmul.msk.f32.vlgmr.msrb.gmra.mxu3 %vm493_vm1, %v492_v37 }
  0x4c   : > { %3708 = vmatpush.msk.msrb.mxu2 %vm497_vm0, %v4130_v33  ;;  %3704 = vmatpush.msk.msrb.mxu0 %vm497_vm0, %v4130_v33 }
  0x4d   : > { %3706 = vmatpush.msk.msrb.mxu1 %vm497_vm0, %v4130_v33  ;;  %3710 = vmatpush.msk.msrb.mxu3 %vm497_vm0, %v4130_v33 }
  0x52   : > { %3697 = vmatmul.msk.f32.vlgmr.msra.gmra.mxu0 %vm493_vm1, %v1259_v38  ;;  %3699 = vmatmul.msk.f32.vlgmr.msra.gmra.mxu1 %vm493_vm1, %v1285_v39 }
  0x53   : > { %3701 = vmatmul.msk.f32.vlgmr.msra.gmra.mxu2 %vm493_vm1, %v1308_v40  ;;  %3703 = vmatmul.msk.f32.vlgmr.msra.gmra.mxu3 %vm493_vm1, %v1331_v41 }
  0x54   : > { %3716 = vmatpush.msk.msra.mxu2 %vm497_vm0, %v3931_v1  ;;  %3712 = vmatpush.msk.msra.mxu0 %vm497_vm0, %v3931_v1 }
  0x55   : > { %3714 = vmatpush.msk.msra.mxu1 %vm497_vm0, %v3931_v1  ;;  %3718 = vmatpush.msk.msra.mxu3 %vm497_vm0, %v3931_v1 }
  0x5a   : > { %3705 = vmatmul.msk.f32.vlgmr.msrb.gmra.mxu0 %vm493_vm1, %v1354_v42  ;;  %3707 = vmatmul.msk.f32.vlgmr.msrb.gmra.mxu1 %vm493_vm1, %v1377_v43 }
  0x5b   : > { %3709 = vmatmul.msk.f32.vlgmr.msrb.gmra.mxu2 %vm493_vm1, %v1400_v44  ;;  %3711 = vmatmul.msk.f32.vlgmr.msrb.gmra.mxu3 %vm493_vm1, %v1423_v45 }
  0x5c   : > { %3724 = vmatpush.msk.msrb.mxu2 %vm497_vm0, %v3931_v1  ;;  %3720 = vmatpush.msk.msrb.mxu0 %vm497_vm0, %v3931_v1 }
  0x5d   : > { %3722 = vmatpush.msk.msrb.mxu1 %vm497_vm0, %v3931_v1  ;;  %3726 = vmatpush.msk.msrb.mxu3 %vm497_vm0, %v3931_v1  ;;  %v2231_v1 = vrot.slane %v4076_v23, 1 }
  0x62   : > { %3713 = vmatmul.msk.f32.vlgmr.msra.gmra.mxu0 %vm493_vm1, %v485_v29  ;;  %3715 = vmatmul.msk.f32.vlgmr.msra.gmra.mxu1 %vm493_vm1, %v486_v30 }
  0x63   : > { %3717 = vmatmul.msk.f32.vlgmr.msra.gmra.mxu2 %vm493_vm1, %v487_v31  ;;  %3719 = vmatmul.msk.f32.vlgmr.msra.gmra.mxu3 %vm493_vm1, %v488_v32 }
  0x64   : > { %3732 = vmatpush.msk.msra.mxu2 %vm497_vm0, %v3959_v2  ;;  %3728 = vmatpush.msk.msra.mxu0 %vm497_vm0, %v3959_v2 }
  0x65   : > { %3730 = vmatpush.msk.msra.mxu1 %vm497_vm0, %v3959_v2  ;;  %3734 = vmatpush.msk.msra.mxu3 %vm497_vm0, %v3959_v2 }
  0x6a   : > { %3721 = vmatmul.msk.f32.vlgmr.msrb.gmra.mxu0 %vm493_vm1, %v489_v34  ;;  %3723 = vmatmul.msk.f32.vlgmr.msrb.gmra.mxu1 %vm493_vm1, %v490_v35 }
  0x6b   : > { %3725 = vmatmul.msk.f32.vlgmr.msrb.gmra.mxu2 %vm493_vm1, %v491_v36  ;;  %3727 = vmatmul.msk.f32.vlgmr.msrb.gmra.mxu3 %vm493_vm1, %v492_v37  ;;  %v4373_v37 = vld [vmem:[%s4722_s5] ss:$0 sm:$0xff] }
  0x6c   : > { %3740 = vmatpush.msk.msrb.mxu2 %vm497_vm0, %v3959_v2  ;;  %3736 = vmatpush.msk.msrb.mxu0 %vm497_vm0, %v3959_v2 }
  0x6d   : > { %3738 = vmatpush.msk.msrb.mxu1 %vm497_vm0, %v3959_v2  ;;  %3742 = vmatpush.msk.msrb.mxu3 %vm497_vm0, %v3959_v2 }
  0x72   : > { %3729 = vmatmul.msk.f32.vlgmr.msra.gmra.mxu0 %vm493_vm1, %v4070_v20  ;;  %3731 = vmatmul.msk.f32.vlgmr.msra.gmra.mxu1 %vm493_vm1, %v4072_v21  ;;  %v3859_v20 = vmov 0.0  }
  0x73   : > { %3733 = vmatmul.msk.f32.vlgmr.msra.gmra.mxu2 %vm493_vm1, %v4074_v22  ;;  %3735 = vmatmul.msk.f32.vlgmr.msra.gmra.mxu3 %vm493_vm1, %v4076_v23  ;;  %2399 = vst.msk [vmem:[#allocation3] sm:$0x1] %vm2382_vm2, %v3859_v20 }
  0x74   : > { %3748 = vmatpush.msk.msra.mxu2 %vm497_vm0, %v4024_v15  ;;  %3744 = vmatpush.msk.msra.mxu0 %vm497_vm0, %v4024_v15  ;;  %2383 = vst.msk [vmem:[#allocation2] sm:$0x1] %vm2382_vm2, %v3859_v20 }
  0x75   : > { %3746 = vmatpush.msk.msra.mxu1 %vm497_vm0, %v4024_v15  ;;  %3750 = vmatpush.msk.msra.mxu3 %vm497_vm0, %v4024_v15  ;;  %2384 = vst.msk [vmem:[#allocation2 + $0x8] sm:$0x1] %vm2382_vm2, %v3859_v20 }
  0x76   : > { %2385 = vst.msk [vmem:[#allocation2 + $0x10] sm:$0x1] %vm2382_vm2, %v3859_v20 }
  0x77   : > { %2386 = vst.msk [vmem:[#allocation2 + $0x18] sm:$0x1] %vm2382_vm2, %v3859_v20 }
  0x78   : > { %2387 = vst.msk [vmem:[#allocation2 + $0x20] sm:$0x1] %vm2382_vm2, %v3859_v20 }
  0x79   : > { %2388 = vst.msk [vmem:[#allocation2 + $0x28] sm:$0x1] %vm2382_vm2, %v3859_v20 }
  0x7a   : > { %3737 = vmatmul.msk.f32.vlgmr.msrb.gmra.mxu0 %vm493_vm1, %v4099_v25  ;;  %3739 = vmatmul.msk.f32.vlgmr.msrb.gmra.mxu1 %vm493_vm1, %v4101_v26  ;;  %2389 = vst.msk [vmem:[#allocation2 + $0x30] sm:$0x1] %vm2382_vm2, %v3859_v20 }
  0x7b   : > { %3741 = vmatmul.msk.f32.vlgmr.msrb.gmra.mxu2 %vm493_vm1, %v4103_v27  ;;  %3743 = vmatmul.msk.f32.vlgmr.msrb.gmra.mxu3 %vm493_vm1, %v4105_v28  ;;  %2390 = vst.msk [vmem:[#allocation2 + $0x38] sm:$0x1] %vm2382_vm2, %v3859_v20 }
  0x7c   : > { %3756 = vmatpush.msk.msrb.mxu2 %vm497_vm0, %v4024_v15  ;;  %3752 = vmatpush.msk.msrb.mxu0 %vm497_vm0, %v4024_v15  ;;  %2391 = vst.msk [vmem:[#allocation2 + $0x5] sm:$0x1] %vm2382_vm2, %v3859_v20 }
  0x7d   : > { %3754 = vmatpush.msk.msrb.mxu1 %vm497_vm0, %v4024_v15  ;;  %3758 = vmatpush.msk.msrb.mxu3 %vm497_vm0, %v4024_v15  ;;  %2392 = vst.msk [vmem:[#allocation2 + $0xd] sm:$0x1] %vm2382_vm2, %v3859_v20 }
  0x7e   : > { %2393 = vst.msk [vmem:[#allocation2 + $0x15] sm:$0x1] %vm2382_vm2, %v3859_v20 }
  0x7f   : > { %2394 = vst.msk [vmem:[#allocation2 + $0x1d] sm:$0x1] %vm2382_vm2, %v3859_v20 }
  0x80   : > { %2395 = vst.msk [vmem:[#allocation2 + $0x25] sm:$0x1] %vm2382_vm2, %v3859_v20 }
  0x81   : > { %2396 = vst.msk [vmem:[#allocation2 + $0x2d] sm:$0x1] %vm2382_vm2, %v3859_v20 }
  0x82   : > { %3745 = vmatmul.msk.f32.vlgmr.msra.gmra.mxu0 %vm493_vm1, %v1259_v38  ;;  %3747 = vmatmul.msk.f32.vlgmr.msra.gmra.mxu1 %vm493_vm1, %v1285_v39  ;;  %2397 = vst.msk [vmem:[#allocation2 + $0x35] sm:$0x1] %vm2382_vm2, %v3859_v20 }
  0x83   : > { %3749 = vmatmul.msk.f32.vlgmr.msra.gmra.mxu2 %vm493_vm1, %v1308_v40  ;;  %3751 = vmatmul.msk.f32.vlgmr.msra.gmra.mxu3 %vm493_vm1, %v1331_v41  ;;  %2398 = vst.msk [vmem:[#allocation2 + $0x3d] sm:$0x1] %vm2382_vm2, %v3859_v20 }
  0x84   : > { %3764 = vmatpush.msk.msra.mxu2 %vm497_vm0, %v4081_v24  ;;  %3760 = vmatpush.msk.msra.mxu0 %vm497_vm0, %v4081_v24  ;;  %2400 = vst.msk [vmem:[#allocation3 + $0x8] sm:$0x1] %vm2382_vm2, %v3859_v20 }
  0x85   : > { %3762 = vmatpush.msk.msra.mxu1 %vm497_vm0, %v4081_v24  ;;  %3766 = vmatpush.msk.msra.mxu3 %vm497_vm0, %v4081_v24  ;;  %2401 = vst.msk [vmem:[#allocation3 + $0x10] sm:$0x1] %vm2382_vm2, %v3859_v20 }
  0x86   : > { %2402 = vst.msk [vmem:[#allocation3 + $0x18] sm:$0x1] %vm2382_vm2, %v3859_v20 }
  0x87   : > { %2403 = vst.msk [vmem:[#allocation3 + $0x20] sm:$0x1] %vm2382_vm2, %v3859_v20 }
  0x88   : > { %2404 = vst.msk [vmem:[#allocation3 + $0x28] sm:$0x1] %vm2382_vm2, %v3859_v20 }
  0x89   : > { %2405 = vst.msk [vmem:[#allocation3 + $0x30] sm:$0x1] %vm2382_vm2, %v3859_v20 }
  0x8a   : > { %3753 = vmatmul.msk.f32.vlgmr.msrb.gmra.mxu0 %vm493_vm1, %v1354_v42  ;;  %3755 = vmatmul.msk.f32.vlgmr.msrb.gmra.mxu1 %vm493_vm1, %v1377_v43  ;;  %2406 = vst.msk [vmem:[#allocation3 + $0x38] sm:$0x1] %vm2382_vm2, %v3859_v20 }
  0x8b   : > { %3757 = vmatmul.msk.f32.vlgmr.msrb.gmra.mxu2 %vm493_vm1, %v1400_v44  ;;  %3759 = vmatmul.msk.f32.vlgmr.msrb.gmra.mxu3 %vm493_vm1, %v1423_v45 }
  0x8c   : > { %3772 = vmatpush.msk.msrb.mxu2 %vm497_vm0, %v4081_v24  ;;  %3768 = vmatpush.msk.msrb.mxu0 %vm497_vm0, %v4081_v24 }
  0x8d   : > { %3770 = vmatpush.msk.msrb.mxu1 %vm497_vm0, %v4081_v24  ;;  %3774 = vmatpush.msk.msrb.mxu3 %vm497_vm0, %v4081_v24 }
  0x8f   : > { %v4272_v50 = vpop.f32.mrf.mxu0  ;;  %v4274_v51 = vpop.f32.mrf.mxu1 }
  0x92   : > { %3761 = vmatmul.msk.f32.vlgmr.msra.gmra.mxu0 %vm493_vm1, %v1970_v46  ;;  %3763 = vmatmul.msk.f32.vlgmr.msra.gmra.mxu1 %vm493_vm1, %v1993_v47 }
  0x93   : > { %3765 = vmatmul.msk.f32.vlgmr.msra.gmra.mxu2 %vm493_vm1, %v2016_v48  ;;  %3767 = vmatmul.msk.f32.vlgmr.msra.gmra.mxu3 %vm493_vm1, %v2039_v49 }
  0x94   : > { %3780 = vmatpush.msk.msra.mxu2 %vm497_vm0, %v4130_v33  ;;  %3776 = vmatpush.msk.msra.mxu0 %vm497_vm0, %v4130_v33 }
  0x95   : > { %3778 = vmatpush.msk.msra.mxu1 %vm497_vm0, %v4130_v33  ;;  %3782 = vmatpush.msk.msra.mxu3 %vm497_vm0, %v4130_v33 }
  0x96   : > { %v4290_v54 = vpop.f32.mrf.mxu2  ;;  %v4292_v55 = vpop.f32.mrf.mxu3 }
  0x97   : > { %v4296_v58 = vpop.f32.mrf.mxu0  ;;  %v4298_v59 = vpop.f32.mrf.mxu1 }
  0x9a   : > { %3769 = vmatmul.msk.f32.vlgmr.msrb.gmra.mxu0 %vm493_vm1, %v2062_v52  ;;  %3771 = vmatmul.msk.f32.vlgmr.msrb.gmra.mxu1 %vm493_vm1, %v2085_v53 }
  0x9b   : > { %3773 = vmatmul.msk.f32.vlgmr.msrb.gmra.mxu2 %vm493_vm1, %v2108_v56  ;;  %3775 = vmatmul.msk.f32.vlgmr.msrb.gmra.mxu3 %vm493_vm1, %v2131_v57 }
  0x9c   : > { %3788 = vmatpush.msk.msrb.mxu2 %vm497_vm0, %v4130_v33  ;;  %3784 = vmatpush.msk.msrb.mxu0 %vm497_vm0, %v4130_v33 }
  0x9d   : > { %3786 = vmatpush.msk.msrb.mxu1 %vm497_vm0, %v4130_v33  ;;  %3790 = vmatpush.msk.msrb.mxu3 %vm497_vm0, %v4130_v33 }
  0x9e   : > { %v4314_v62 = vpop.f32.mrf.mxu2  ;;  %v4316_v63 = vpop.f32.mrf.mxu3 }
  0x9f   : > { %v705_v2 = vpop.f32.mrf.mxu0  ;;  %v728_v3 = vpop.f32.mrf.mxu1 }
  0xa0   : > { %v706_v29 = vadd.f32 %v705_v2, %v4272_v50  ;;  %v729_v30 = vadd.f32 %v728_v3, %v4274_v51 }
  0xa2   : > { %3777 = vmatmul.msk.f32.vlgmr.msra.gmra.mxu0 %vm493_vm1, %v2162_v60  ;;  %3779 = vmatmul.msk.f32.vlgmr.msra.gmra.mxu1 %vm493_vm1, %v2185_v61 }
  0xa3   : > { %3781 = vmatmul.msk.f32.vlgmr.msra.gmra.mxu2 %vm493_vm1, %v2208_v0  ;;  %3783 = vmatmul.msk.f32.vlgmr.msra.gmra.mxu3 %vm493_vm1, %v2231_v1 }
  0xa6   : > { %v4326_v6 = vpop.f32.mrf.mxu2  ;;  %v4328_v7 = vpop.f32.mrf.mxu3 }
  0xa7   : > { %v4332_v10 = vpop.f32.mrf.mxu0  ;;  %v4334_v11 = vpop.f32.mrf.mxu1  ;;  %v752_v42 = vadd.f32 %v4326_v6, %v4290_v54  ;;  %v775_v43 = vadd.f32 %v4328_v7, %v4292_v55 }
  0xa8   : > { %v798_v44 = vadd.f32 %v4332_v10, %v4296_v58  ;;  %v821_v45 = vadd.f32 %v4334_v11, %v4298_v59 }
  0xaa   : > { %3785 = vmatmul.msk.f32.vlgmr.msrb.gmra.mxu0 %vm493_vm1, %v2254_v4  ;;  %3787 = vmatmul.msk.f32.vlgmr.msrb.gmra.mxu1 %vm493_vm1, %v2277_v5 }
  0xab   : > { %3789 = vmatmul.msk.f32.vlgmr.msrb.gmra.mxu2 %vm493_vm1, %v2300_v8  ;;  %3791 = vmatmul.msk.f32.vlgmr.msrb.gmra.mxu3 %vm493_vm1, %v2323_v9 }
  0xae   : > { %v4340_v12 = vpop.f32.mrf.mxu2  ;;  %v4342_v13 = vpop.f32.mrf.mxu3 }
  0xaf   : > { %v892_v14 = vpop.f32.mrf.mxu0  ;;  %v915_v15 = vpop.f32.mrf.mxu1  ;;  %v844_v6 = vadd.f32 %v4340_v12, %v4314_v62  ;;  %v867_v7 = vadd.f32 %v4342_v13, %v4316_v63 }
  0xb0   : > { %v1056_v31 = vadd.f32 %v892_v14, %v706_v29  ;;  %v1057_v32 = vadd.f32 %v915_v15, %v729_v30 }
  0xb6   : > { %v938_v16 = vpop.f32.mrf.mxu2  ;;  %v961_v17 = vpop.f32.mrf.mxu3 }
  0xb7   : > { %v984_v18 = vpop.f32.mrf.mxu0  ;;  %v1007_v19 = vpop.f32.mrf.mxu1  ;;  %v1058_v48 = vadd.f32 %v938_v16, %v752_v42  ;;  %v1059_v49 = vadd.f32 %v961_v17, %v775_v43 }
  0xb8   : > { %v1060_v50 = vadd.f32 %v984_v18, %v798_v44  ;;  %v1061_v51 = vadd.f32 %v1007_v19, %v821_v45 }
  0xbe   : > { %v4348_v21 = vpop.f32.mrf.mxu2  ;;  %v4350_v22 = vpop.f32.mrf.mxu3 }
  0xbf   : > { %v1087_v23 = vpop.f32.mrf.mxu0  ;;  %v1110_v24 = vpop.f32.mrf.mxu1  ;;  %v1062_v14 = vadd.f32 %v4348_v21, %v844_v6  ;;  %v1063_v15 = vadd.f32 %v4350_v22, %v867_v7 }
  0xc0   : > { %v1251_v33 = vadd.f32 %v1087_v23, %v1056_v31  ;;  %v1252_v34 = vadd.f32 %v1110_v24, %v1057_v32 }
  0xc6   : > { %v1133_v25 = vpop.f32.mrf.mxu2  ;;  %v1156_v26 = vpop.f32.mrf.mxu3 }
  0xc7   : > { %v1179_v27 = vpop.f32.mrf.mxu0  ;;  %v1202_v28 = vpop.f32.mrf.mxu1  ;;  %v1253_v54 = vadd.f32 %v1133_v25, %v1058_v48  ;;  %v1254_v55 = vadd.f32 %v1156_v26, %v1059_v49 }
  0xc8   : > { %v1255_v56 = vadd.f32 %v1179_v27, %v1060_v50  ;;  %v1256_v57 = vadd.f32 %v1202_v28, %v1061_v51 }
  0xce   : > { %v1225_v35 = vpop.f32.mrf.mxu2  ;;  %v1248_v36 = vpop.f32.mrf.mxu3 }
  0xcf   : > { %v1282_v38 = vpop.f32.mrf.mxu0  ;;  %v1305_v39 = vpop.f32.mrf.mxu1  ;;  %v1257_v18 = vadd.f32 %v1225_v35, %v1062_v14  ;;  %v1258_v63 = vadd.f32 %v1248_v36, %v1063_v15  ;;  %v4466_v14 = vld [vmem:[%s4722_s5] ss:$0 sm:$0xff] }
  0xd0   : > { %v1446_v40 = vadd.f32 %v1282_v38, %v1251_v33  ;;  %v1447_v41 = vadd.f32 %v1305_v39, %v1252_v34 }
  0xd2   : > { %v1458_v46 = vadd.f32 %v4373_v37, %v1446_v40  ;;  %v1459_v47 = vadd.f32 %v4373_v37, %v1447_v41 }
  0xd4   : > { %v1466_v52 = vmul.f32 0.2, %v1458_v46  ;;  %v1467_v53 = vmul.f32 0.2, %v1459_v47 }
  0xd6   : > { %v1474_v60 = vmax.f32 %v1458_v46, %v1466_v52  ;;  %v1475_v58 = vmax.f32 %v1459_v47, %v1467_v53  ;;  %v1328_v61 = vpop.f32.mrf.mxu2  ;;  %v1351_v0 = vpop.f32.mrf.mxu3 }
  0xd7   : > { %v1448_v59 = vadd.f32 %v1328_v61, %v1253_v54  ;;  %v1449_v1 = vadd.f32 %v1351_v0, %v1254_v55  ;;  %v1374_v2 = vpop.f32.mrf.mxu0  ;;  %v1397_v3 = vpop.f32.mrf.mxu1  ;;  %v3619_v54 = vld [vmem:[%s4723_s6 + $0x38] sm:$0xff]  ;;  %v3618_v55 = vld [vmem:[%s4723_s6 + $0x30] sm:$0xff]  ;;  %v3616_v0 = vld [vmem:[%s4723_s6 + $0x20] sm:$0xff] }
  0xd8   : > { %2408 = vst.msk [vmem:[#allocation2 + $0x1] sm:$0xf] %vm2407_vm3, %v1474_v60  ;;  %v1450_v4 = vadd.f32 %v1374_v2, %v1255_v56  ;;  %v1451_v5 = vadd.f32 %v1397_v3, %v1256_v57  ;;  %2456 = vmatpush.msra.mxu0 %v3619_v54  ;;  %2479 = vmatpush.msra.mxu1 %v3619_v54  ;;  %v3617_v60 = vld [vmem:[%s4723_s6 + $0x28] sm:$0xff] }
  0xd9   : > { %2409 = vst.msk [vmem:[#allocation2 + $0x9] sm:$0xf] %vm2407_vm3, %v1475_v58  ;;  %v1460_v8 = vadd.f32 %v4373_v37, %v1448_v59  ;;  %v1461_v9 = vadd.f32 %v4373_v37, %v1449_v1  ;;  %2502 = vmatpush.msra.mxu2 %v3619_v54  ;;  %2525 = vmatpush.msra.mxu3 %v3619_v54 }
  0xda   : > { %v1462_v10 = vadd.f32 %v4373_v37, %v1450_v4  ;;  %v1463_v11 = vadd.f32 %v4373_v37, %v1451_v5  ;;  %2457 = vmatpush.msra.mxu0 %v3618_v55  ;;  %2480 = vmatpush.msra.mxu1 %v3618_v55 }
  0xdb   : > { %v1468_v16 = vmul.f32 0.2, %v1460_v8  ;;  %v1469_v17 = vmul.f32 0.2, %v1461_v9  ;;  %2503 = vmatpush.msra.mxu2 %v3618_v55  ;;  %2526 = vmatpush.msra.mxu3 %v3618_v55 }
  0xdc   : > { %v1470_v62 = vmul.f32 0.2, %v1462_v10  ;;  %v1471_v12 = vmul.f32 0.2, %v1463_v11  ;;  %2458 = vmatpush.msra.mxu0 %v3617_v60  ;;  %2481 = vmatpush.msra.mxu1 %v3617_v60 }
  0xdd   : > { %v1476_v13 = vmax.f32 %v1460_v8, %v1468_v16  ;;  %v1477_v19 = vmax.f32 %v1461_v9, %v1469_v17  ;;  %2504 = vmatpush.msra.mxu2 %v3617_v60  ;;  %2527 = vmatpush.msra.mxu3 %v3617_v60 }
  0xde   : > { %v1478_v20 = vmax.f32 %v1462_v10, %v1470_v62  ;;  %v1479_v23 = vmax.f32 %v1463_v11, %v1471_v12  ;;  %v1420_v24 = vpop.f32.mrf.mxu2  ;;  %v1443_v25 = vpop.f32.mrf.mxu3  ;;  %2459 = vmatpush.msra.mxu0 %v3616_v0  ;;  %2482 = vmatpush.msra.mxu1 %v3616_v0 }
  0xdf   : > { %2410 = vst.msk [vmem:[#allocation2 + $0x11] sm:$0xf] %vm2407_vm3, %v1476_v13  ;;  %v1452_v26 = vadd.f32 %v1420_v24, %v1257_v18  ;;  %v1453_v27 = vadd.f32 %v1443_v25, %v1258_v63  ;;  %v4402_v28 = vpop.f32.mrf.mxu0  ;;  %v4404_v21 = vpop.f32.mrf.mxu1  ;;  %2505 = vmatpush.msra.mxu2 %v3616_v0  ;;  %2528 = vmatpush.msra.mxu3 %v3616_v0 }
  0xe0   : > { %2411 = vst.msk [vmem:[#allocation2 + $0x19] sm:$0xf] %vm2407_vm3, %v1477_v19  ;;  %2548 = vmatpush.msrb.mxu0 %v3619_v54  ;;  %2571 = vmatpush.msrb.mxu1 %v3619_v54 }
  0xe1   : > { %2412 = vst.msk [vmem:[#allocation2 + $0x21] sm:$0xf] %vm2407_vm3, %v1478_v20  ;;  %v1464_v22 = vadd.f32 %v4373_v37, %v1452_v26  ;;  %v1465_v29 = vadd.f32 %v4373_v37, %v1453_v27  ;;  %2594 = vmatpush.msrb.mxu2 %v3619_v54  ;;  %2617 = vmatpush.msrb.mxu3 %v3619_v54 }
  0xe2   : > { %2413 = vst.msk [vmem:[#allocation2 + $0x29] sm:$0xf] %vm2407_vm3, %v1479_v23  ;;  %2549 = vmatpush.msrb.mxu0 %v3618_v55  ;;  %2572 = vmatpush.msrb.mxu1 %v3618_v55 }
  0xe3   : > { %v1472_v30 = vmul.f32 0.2, %v1464_v22  ;;  %v1473_v31 = vmul.f32 0.2, %v1465_v29  ;;  %2595 = vmatpush.msrb.mxu2 %v3618_v55  ;;  %2618 = vmatpush.msrb.mxu3 %v3618_v55 }
  0xe4   : > { %2550 = vmatpush.msrb.mxu0 %v3617_v60  ;;  %2573 = vmatpush.msrb.mxu1 %v3617_v60 }
  0xe5   : > { %v1480_v32 = vmax.f32 %v1464_v22, %v1472_v30  ;;  %v1481_v33 = vmax.f32 %v1465_v29, %v1473_v31  ;;  %2596 = vmatpush.msrb.mxu2 %v3617_v60  ;;  %2619 = vmatpush.msrb.mxu3 %v3617_v60 }
  0xe6   : > { %v4411_v34 = vpop.f32.mrf.mxu2  ;;  %v4413_v35 = vpop.f32.mrf.mxu3  ;;  %2551 = vmatpush.msrb.mxu0 %v3616_v0  ;;  %2574 = vmatpush.msrb.mxu1 %v3616_v0 }
  0xe7   : > { %2414 = vst.msk [vmem:[#allocation2 + $0x31] sm:$0xf] %vm2407_vm3, %v1480_v32  ;;  %v4416_v36 = vpop.f32.mrf.mxu0  ;;  %v4418_v38 = vpop.f32.mrf.mxu1  ;;  %2597 = vmatpush.msrb.mxu2 %v3616_v0  ;;  %2620 = vmatpush.msrb.mxu3 %v3616_v0 }
  0xe8   : > { %2415 = vst.msk [vmem:[#allocation2 + $0x39] sm:$0xf] %vm2407_vm3, %v1481_v33 }
  0xee   : > { %v4421_v39 = vpop.f32.mrf.mxu2  ;;  %v4423_v37 = vpop.f32.mrf.mxu3 }
  0xef   : > { %v1659_v40 = vpop.f32.mrf.mxu0  ;;  %v1679_v41 = vpop.f32.mrf.mxu1 }
  0xf0   : > { %v1660_v4 = vadd.f32 %v1659_v40, %v4402_v28  ;;  %v1680_v5 = vadd.f32 %v1679_v41, %v4404_v21 }
  0xf6   : > { %v4425_v42 = vpop.f32.mrf.mxu2  ;;  %v4427_v43 = vpop.f32.mrf.mxu3 }
  0xf7   : > { %v4429_v44 = vpop.f32.mrf.mxu0  ;;  %v4431_v45 = vpop.f32.mrf.mxu1  ;;  %v1700_v12 = vadd.f32 %v4425_v42, %v4411_v34  ;;  %v1720_v18 = vadd.f32 %v4427_v43, %v4413_v35 }
  0xf8   : > { %v1740_v63 = vadd.f32 %v4429_v44, %v4416_v36  ;;  %v1760_v13 = vadd.f32 %v4431_v45, %v4418_v38 }
  0xfe   : > { %v4433_v46 = vpop.f32.mrf.mxu2  ;;  %v4435_v47 = vpop.f32.mrf.mxu3 }
  0xff   : > { %v1819_v48 = vpop.f32.mrf.mxu0  ;;  %v1839_v49 = vpop.f32.mrf.mxu1  ;;  %v1780_v43 = vadd.f32 %v4433_v46, %v4421_v39  ;;  %v1800_v44 = vadd.f32 %v4435_v47, %v4423_v37 }
 0x100   : > { %v1962_v6 = vadd.f32 %v1819_v48, %v1660_v4  ;;  %v1963_v7 = vadd.f32 %v1839_v49, %v1680_v5  ;;  %v439_v4 = vld [vmem:[%s4723_s6 + $0x10] sm:$0xff] }
 0x106   : > { %v4437_v50 = vpop.f32.mrf.mxu2  ;;  %v4439_v51 = vpop.f32.mrf.mxu3 }
 0x107   : > { %v4441_v52 = vpop.f32.mrf.mxu0  ;;  %v4443_v53 = vpop.f32.mrf.mxu1  ;;  %v1964_v23 = vadd.f32 %v4437_v50, %v1700_v12  ;;  %v1965_v24 = vadd.f32 %v4439_v51, %v1720_v18 }
 0x108   : > { %v1966_v25 = vadd.f32 %v4441_v52, %v1740_v63  ;;  %v1967_v26 = vadd.f32 %v4443_v53, %v1760_v13  ;;  %v4546_v63 = vld [vmem:[#allocation2] sm:$0x3f]  ;;  %v4550_v13 = vld [vmem:[#allocation2 + $0x8] sm:$0x3f] }
 0x10e   : > { %v4451_v56 = vpop.f32.mrf.mxu2  ;;  %v4453_v57 = vpop.f32.mrf.mxu3 }
 0x10f   : > { %v1990_v58 = vpop.f32.mrf.mxu0  ;;  %v2013_v61 = vpop.f32.mrf.mxu1  ;;  %v1968_v51 = vadd.f32 %v4451_v56, %v1780_v43  ;;  %v1969_v52 = vadd.f32 %v4453_v57, %v1800_v44 }
 0x110   : > { %v2154_v8 = vadd.f32 %v1990_v58, %v1962_v6  ;;  %v2155_v9 = vadd.f32 %v2013_v61, %v1963_v7  ;;  %v438_v7 = vld [vmem:[%s4723_s6 + $0x8] sm:$0xff] }
 0x116   : > { %v2036_v59 = vpop.f32.mrf.mxu2  ;;  %v2059_v1 = vpop.f32.mrf.mxu3 }
 0x117   : > { %v2082_v2 = vpop.f32.mrf.mxu0  ;;  %v2105_v3 = vpop.f32.mrf.mxu1  ;;  %v2156_v21 = vadd.f32 %v2036_v59, %v1964_v23  ;;  %v2157_v22 = vadd.f32 %v2059_v1, %v1965_v24  ;;  %v440_v1 = vld [vmem:[%s4723_s6 + $0x18] sm:$0xff]  ;;  %v4560_v23 = vld [vmem:[#allocation2 + $0x10] sm:$0x3f] }
 0x118   : > { %v2158_v29 = vadd.f32 %v2082_v2, %v1966_v25  ;;  %v2159_v30 = vadd.f32 %v2105_v3, %v1967_v26  ;;  %v4564_v24 = vld [vmem:[#allocation2 + $0x18] sm:$0x3f]  ;;  %v4568_v25 = vld [vmem:[#allocation2 + $0x20] sm:$0x3f]  ;;  %v4572_v26 = vld [vmem:[#allocation2 + $0x28] sm:$0x3f] }
 0x11e   : > { %v2128_v10 = vpop.f32.mrf.mxu2  ;;  %v2151_v11 = vpop.f32.mrf.mxu3 }
 0x11f   : > { %v2182_v15 = vpop.f32.mrf.mxu0  ;;  %v2205_v16 = vpop.f32.mrf.mxu1  ;;  %v2160_v37 = vadd.f32 %v2128_v10, %v1968_v51  ;;  %v2161_v47 = vadd.f32 %v2151_v11, %v1969_v52  ;;  %v437_v10 = vld [vmem:[%s4723_s6] sm:$0xff]  ;;  %v3631_v51 = vld [vmem:[%s4723_s6 + $0x98] sm:$0xff]  ;;  %v3630_v52 = vld [vmem:[%s4723_s6 + $0x90] sm:$0xff] }
 0x120   : > { %v2346_v17 = vadd.f32 %v2182_v15, %v2154_v8  ;;  %v2347_v62 = vadd.f32 %v2205_v16, %v2155_v9 }
 0x122   : > { %v2358_v19 = vadd.f32 %v4466_v14, %v2346_v17  ;;  %v2359_v20 = vadd.f32 %v4466_v14, %v2347_v62 }
 0x124   : > { %v2366_v27 = vmul.f32 0.2, %v2358_v19  ;;  %v2367_v28 = vmul.f32 0.2, %v2359_v20 }
 0x126   : > { %v2374_v31 = vmax.f32 %v2358_v19, %v2366_v27  ;;  %v2375_v32 = vmax.f32 %v2359_v20, %v2367_v28  ;;  %v2228_v33 = vpop.f32.mrf.mxu2  ;;  %v2251_v34 = vpop.f32.mrf.mxu3  ;;  %v3623_v19 = vld [vmem:[%s4723_s6 + $0x58] sm:$0xff]  ;;  %v3622_v20 = vld [vmem:[%s4723_s6 + $0x50] sm:$0xff]  ;;  %v3621_v27 = vld [vmem:[%s4723_s6 + $0x48] sm:$0xff] }
 0x127   : > { %v2348_v35 = vadd.f32 %v2228_v33, %v2156_v21  ;;  %v2349_v36 = vadd.f32 %v2251_v34, %v2157_v22  ;;  %v2274_v38 = vpop.f32.mrf.mxu0  ;;  %v2297_v40 = vpop.f32.mrf.mxu1  ;;  %v3620_v28 = vld [vmem:[%s4723_s6 + $0x40] sm:$0xff]  ;;  %v4582_v21 = vld [vmem:[#allocation2 + $0x30] sm:$0x3f]  ;;  %v2809_v22 = vrot.slane %v4546_v63, 1  ;;  %v2901_v33 = vrot.slane %v4568_v25, 1 }
 0x128   : > { %2416 = vst.msk [vmem:[#allocation3 + $0x1] sm:$0xf] %vm2407_vm3, %v2374_v31  ;;  %v2350_v41 = vadd.f32 %v2274_v38, %v2158_v29  ;;  %v2351_v42 = vadd.f32 %v2297_v40, %v2159_v30  ;;  %v4587_v29 = vld [vmem:[#allocation2 + $0x38] sm:$0x3f]  ;;  %v2832_v30 = vrot.slane %v4550_v13, 1  ;;  %v2855_v31 = vrot.slane %v4560_v23, 1 }
 0x129   : > { %2417 = vst.msk [vmem:[#allocation3 + $0x9] sm:$0xf] %vm2407_vm3, %v2375_v32  ;;  %v2360_v45 = vadd.f32 %v4466_v14, %v2348_v35  ;;  %v2361_v48 = vadd.f32 %v4466_v14, %v2349_v36  ;;  %v2878_v32 = vrot.slane %v4564_v24, 1  ;;  %v2924_v34 = vrot.slane %v4572_v26, 1  ;;  %v3627_v35 = vld [vmem:[%s4723_s6 + $0x78] sm:$0xff]  ;;  %v3626_v36 = vld [vmem:[%s4723_s6 + $0x70] sm:$0xff] }
 0x12a   : > { %v2362_v49 = vadd.f32 %v4466_v14, %v2350_v41  ;;  %v2363_v50 = vadd.f32 %v4466_v14, %v2351_v42  ;;  %v3625_v38 = vld [vmem:[%s4723_s6 + $0x68] sm:$0xff]  ;;  %v2947_v40 = vrot.slane %v4582_v21, 1  ;;  %v2970_v41 = vrot.slane %v4587_v29, 1  ;;  %v3624_v42 = vld [vmem:[%s4723_s6 + $0x60] sm:$0xff] }
 0x12b   : > { %v2368_v53 = vmul.f32 0.2, %v2360_v45  ;;  %v2369_v54 = vmul.f32 0.2, %v2361_v48 }
 0x12c   : > { %v2370_v39 = vmul.f32 0.2, %v2362_v49  ;;  %v2371_v46 = vmul.f32 0.2, %v2363_v50 }
 0x12d   : > { %v2376_v55 = vmax.f32 %v2360_v45, %v2368_v53  ;;  %v2377_v60 = vmax.f32 %v2361_v48, %v2369_v54  ;;  %v3629_v53 = vld [vmem:[%s4723_s6 + $0x88] sm:$0xff] }
 0x12e   : > { %v2378_v58 = vmax.f32 %v2362_v49, %v2370_v39  ;;  %v2379_v61 = vmax.f32 %v2363_v50, %v2371_v46  ;;  %v2320_v0 = vpop.f32.mrf.mxu2  ;;  %v2343_v59 = vpop.f32.mrf.mxu3  ;;  %v3628_v46 = vld [vmem:[%s4723_s6 + $0x80] sm:$0xff] }
 0x12f   : > { %2418 = vst.msk [vmem:[#allocation3 + $0x11] sm:$0xf] %vm2407_vm3, %v2376_v55  ;;  %v2352_v56 = vadd.f32 %v2320_v0, %v2160_v37  ;;  %v2353_v57 = vadd.f32 %v2343_v59, %v2161_v47  ;;  %v4498_v2 = vld [vmem:[#allocation3] sm:$0x1f]  ;;  %v3193_v37 = vrot.slane %v4546_v63, 2  ;;  %v3216_v47 = vrot.slane %v4550_v13, 2 }
 0x130   : > { %2419 = vst.msk [vmem:[#allocation3 + $0x19] sm:$0xf] %vm2407_vm3, %v2377_v60  ;;  %3792 = vmatmul.msk.f32.vlgmr.msra.gmra.mxu0 %vm2440_vm4, %v4498_v2  ;;  %v4503_v3 = vld [vmem:[#allocation3 + $0x8] sm:$0x1f]  ;;  %v3001_v43 = vrot.slane %v4498_v2, 1  ;;  %v3239_v55 = vrot.slane %v4560_v23, 2 }
 0x131   : > { %2420 = vst.msk [vmem:[#allocation3 + $0x21] sm:$0xf] %vm2407_vm3, %v2378_v58  ;;  %v2364_v5 = vadd.f32 %v4466_v14, %v2352_v56  ;;  %v2365_v6 = vadd.f32 %v4466_v14, %v2353_v57  ;;  %3793 = vmatmul.msk.f32.vlgmr.msra.gmra.mxu1 %vm2440_vm4, %v4503_v3  ;;  %2640 = vmatpush.msra.mxu0 %v440_v1  ;;  %v3024_v44 = vrot.slane %v4503_v3, 1  ;;  %v3262_v60 = vrot.slane %v4564_v24, 2 }
 0x132   : > { %2421 = vst.msk [vmem:[#allocation3 + $0x29] sm:$0xf] %vm2407_vm3, %v2379_v61  ;;  %2663 = vmatpush.msra.mxu1 %v440_v1  ;;  %v3285_v58 = vrot.slane %v4568_v25, 2  ;;  %v3308_v61 = vrot.slane %v4572_v26, 2  ;;  %v3331_v0 = vrot.slane %v4582_v21, 2  ;;  %v3354_v59 = vrot.slane %v4587_v29, 2 }
 0x133   : > { %v2372_v8 = vmul.f32 0.2, %v2364_v5  ;;  %v2373_v9 = vmul.f32 0.2, %v2365_v6  ;;  %2641 = vmatpush.msra.mxu0 %v439_v4 }
 0x134   : > { %2664 = vmatpush.msra.mxu1 %v439_v4 }
 0x135   : > { %v2380_v11 = vmax.f32 %v2364_v5, %v2372_v8  ;;  %v2381_v14 = vmax.f32 %v2365_v6, %v2373_v9  ;;  %2642 = vmatpush.msra.mxu0 %v438_v7 }
 0x136   : > { %v4520_v15 = vld [vmem:[#allocation3 + $0x10] sm:$0x1f]  ;;  %2665 = vmatpush.msra.mxu1 %v438_v7 }
 0x137   : > { %2422 = vst.msk [vmem:[#allocation3 + $0x31] sm:$0xf] %vm2407_vm3, %v2380_v11  ;;  %3794 = vmatmul.msk.f32.vlgmr.msra.gmra.mxu2 %vm2440_vm4, %v4520_v15  ;;  %v4525_v16 = vld [vmem:[#allocation3 + $0x18] sm:$0x1f]  ;;  %2643 = vmatpush.msra.mxu0 %v437_v10  ;;  %v3047_v45 = vrot.slane %v4520_v15, 1 }
 0x138   : > { %2423 = vst.msk [vmem:[#allocation3 + $0x39] sm:$0xf] %vm2407_vm3, %v2381_v14  ;;  %3795 = vmatmul.msk.f32.vlgmr.msra.gmra.mxu3 %vm2440_vm4, %v4525_v16  ;;  %v4530_v17 = vld [vmem:[#allocation3 + $0x20] sm:$0x1f]  ;;  %2686 = vmatpush.msra.mxu2 %v440_v1  ;;  %v3070_v48 = vrot.slane %v4525_v16, 1 }
 0x139   : > { %3796 = vmatmul.msk.f32.vlgmr.msrb.gmra.mxu0 %vm2440_vm4, %v4530_v17  ;;  %v4534_v62 = vld [vmem:[#allocation3 + $0x28] sm:$0x1f]  ;;  %2666 = vmatpush.msra.mxu1 %v437_v10  ;;  %v3093_v49 = vrot.slane %v4530_v17, 1 }
 0x13a   : > { %3797 = vmatmul.msk.f32.vlgmr.msrb.gmra.mxu1 %vm2440_vm4, %v4534_v62  ;;  %2709 = vmatpush.msra.mxu3 %v440_v1  ;;  %v3116_v50 = vrot.slane %v4534_v62, 1 }
 0x13b   : > { %2687 = vmatpush.msra.mxu2 %v439_v4  ;;  %2732 = vmatpush.msrb.mxu0 %v440_v1 }
 0x13c   : > { %2710 = vmatpush.msra.mxu3 %v439_v4  ;;  %2755 = vmatpush.msrb.mxu1 %v440_v1 }
 0x13d   : > { %2688 = vmatpush.msra.mxu2 %v438_v7  ;;  %2733 = vmatpush.msrb.mxu0 %v439_v4 }
 0x13e   : > { %v4538_v12 = vld [vmem:[#allocation3 + $0x30] sm:$0x1f]  ;;  %2711 = vmatpush.msra.mxu3 %v438_v7  ;;  %2756 = vmatpush.msrb.mxu1 %v439_v4 }
 0x13f   : > { %3798 = vmatmul.msk.f32.vlgmr.msrb.gmra.mxu2 %vm2440_vm4, %v4538_v12  ;;  %v4542_v18 = vld [vmem:[#allocation3 + $0x38] sm:$0x1f]  ;;  %2734 = vmatpush.msrb.mxu0 %v438_v7  ;;  %v3139_v54 = vrot.slane %v4538_v12, 1 }
 0x140   : > { %3799 = vmatmul.msk.f32.vlgmr.msrb.gmra.mxu3 %vm2440_vm4, %v4542_v18  ;;  %2689 = vmatpush.msra.mxu2 %v437_v10  ;;  %v3162_v39 = vrot.slane %v4542_v18, 1 }
 0x141   : > { %3800 = vmatmul.msk.f32.vlgmr.msra.gmra.mxu0 %vm2440_vm4, %v4546_v63  ;;  %2712 = vmatpush.msra.mxu3 %v437_v10 }
 0x142   : > { %3801 = vmatmul.msk.f32.vlgmr.msra.gmra.mxu1 %vm2440_vm4, %v4550_v13  ;;  %2778 = vmatpush.msrb.mxu2 %v440_v1 }
 0x143   : > { %2757 = vmatpush.msrb.mxu1 %v438_v7  ;;  %2735 = vmatpush.msrb.mxu0 %v437_v10 }
 0x144   : > { %2801 = vmatpush.msrb.mxu3 %v440_v1  ;;  %2779 = vmatpush.msrb.mxu2 %v439_v4 }
 0x145   : > { %2758 = vmatpush.msrb.mxu1 %v437_v10  ;;  %2824 = vmatpush.msra.mxu0 %v3623_v19 }
 0x146   : > { %2802 = vmatpush.msrb.mxu3 %v439_v4  ;;  %2780 = vmatpush.msrb.mxu2 %v438_v7 }
 0x147   : > { %2847 = vmatpush.msra.mxu1 %v3623_v19  ;;  %3802 = vmatmul.msk.f32.vlgmr.msra.gmra.mxu2 %vm2440_vm4, %v4560_v23 }
 0x148   : > { %2825 = vmatpush.msra.mxu0 %v3622_v20  ;;  %3803 = vmatmul.msk.f32.vlgmr.msra.gmra.mxu3 %vm2440_vm4, %v4564_v24 }
 0x149   : > { %3804 = vmatmul.msk.f32.vlgmr.msrb.gmra.mxu0 %vm2440_vm4, %v4568_v25  ;;  %2803 = vmatpush.msrb.mxu3 %v438_v7 }
 0x14a   : > { %3805 = vmatmul.msk.f32.vlgmr.msrb.gmra.mxu1 %vm2440_vm4, %v4572_v26  ;;  %2781 = vmatpush.msrb.mxu2 %v437_v10 }
 0x14b   : > { %2848 = vmatpush.msra.mxu1 %v3622_v20  ;;  %2804 = vmatpush.msrb.mxu3 %v437_v10 }
 0x14c   : > { %2826 = vmatpush.msra.mxu0 %v3621_v27  ;;  %2870 = vmatpush.msra.mxu2 %v3623_v19 }
 0x14d   : > { %2849 = vmatpush.msra.mxu1 %v3621_v27  ;;  %2893 = vmatpush.msra.mxu3 %v3623_v19 }
 0x14e   : > { %2827 = vmatpush.msra.mxu0 %v3620_v28  ;;  %2871 = vmatpush.msra.mxu2 %v3622_v20 }
 0x14f   : > { %3806 = vmatmul.msk.f32.vlgmr.msrb.gmra.mxu2 %vm2440_vm4, %v4582_v21  ;;  %2850 = vmatpush.msra.mxu1 %v3620_v28 }
 0x150   : > { %3807 = vmatmul.msk.f32.vlgmr.msrb.gmra.mxu3 %vm2440_vm4, %v4587_v29  ;;  %2916 = vmatpush.msrb.mxu0 %v3623_v19 }
 0x151   : > { %3808 = vmatmul.msk.f32.vlgmr.msra.gmra.mxu0 %vm2440_vm4, %v2809_v22  ;;  %2894 = vmatpush.msra.mxu3 %v3622_v20 }
 0x152   : > { %3809 = vmatmul.msk.f32.vlgmr.msra.gmra.mxu1 %vm2440_vm4, %v2832_v30  ;;  %2872 = vmatpush.msra.mxu2 %v3621_v27 }
 0x153   : > { %2939 = vmatpush.msrb.mxu1 %v3623_v19  ;;  %2895 = vmatpush.msra.mxu3 %v3621_v27 }
 0x154   : > { %2917 = vmatpush.msrb.mxu0 %v3622_v20  ;;  %2873 = vmatpush.msra.mxu2 %v3620_v28 }
 0x155   : > { %2940 = vmatpush.msrb.mxu1 %v3622_v20  ;;  %2896 = vmatpush.msra.mxu3 %v3620_v28 }
 0x156   : > { %2918 = vmatpush.msrb.mxu0 %v3621_v27  ;;  %2962 = vmatpush.msrb.mxu2 %v3623_v19 }
 0x157   : > { %2941 = vmatpush.msrb.mxu1 %v3621_v27  ;;  %3810 = vmatmul.msk.f32.vlgmr.msra.gmra.mxu2 %vm2440_vm4, %v2855_v31 }
 0x158   : > { %3811 = vmatmul.msk.f32.vlgmr.msra.gmra.mxu3 %vm2440_vm4, %v2878_v32  ;;  %2919 = vmatpush.msrb.mxu0 %v3620_v28 }
 0x159   : > { %2942 = vmatpush.msrb.mxu1 %v3620_v28  ;;  %2985 = vmatpush.msrb.mxu3 %v3623_v19 }
 0x15a   : > { %3812 = vmatmul.msk.f32.vlgmr.msrb.gmra.mxu0 %vm2440_vm4, %v2901_v33  ;;  %3813 = vmatmul.msk.f32.vlgmr.msrb.gmra.mxu1 %vm2440_vm4, %v2924_v34  ;;  %v4673_v33 = vld [vmem:[%s4724_s7] ss:$0 sm:$0xff] }
 0x15b   : > { %2963 = vmatpush.msrb.mxu2 %v3622_v20  ;;  %2986 = vmatpush.msrb.mxu3 %v3622_v20 }
 0x15c   : > { %3016 = vmatpush.msra.mxu0 %v3627_v35  ;;  %3039 = vmatpush.msra.mxu1 %v3627_v35 }
 0x15d   : > { %2964 = vmatpush.msrb.mxu2 %v3621_v27  ;;  %2987 = vmatpush.msrb.mxu3 %v3621_v27 }
 0x15e   : > { %3017 = vmatpush.msra.mxu0 %v3626_v36  ;;  %3040 = vmatpush.msra.mxu1 %v3626_v36 }
 0x15f   : > { %2965 = vmatpush.msrb.mxu2 %v3620_v28  ;;  %2988 = vmatpush.msrb.mxu3 %v3620_v28 }
 0x160   : > { %3018 = vmatpush.msra.mxu0 %v3625_v38  ;;  %3041 = vmatpush.msra.mxu1 %v3625_v38 }
 0x161   : > { %3814 = vmatmul.msk.f32.vlgmr.msrb.gmra.mxu2 %vm2440_vm4, %v2947_v40  ;;  %3815 = vmatmul.msk.f32.vlgmr.msrb.gmra.mxu3 %vm2440_vm4, %v2970_v41 }
 0x162   : > { %3062 = vmatpush.msra.mxu2 %v3627_v35  ;;  %3019 = vmatpush.msra.mxu0 %v3624_v42 }
 0x163   : > { %3042 = vmatpush.msra.mxu1 %v3624_v42  ;;  %3085 = vmatpush.msra.mxu3 %v3627_v35 }
 0x164   : > { %3816 = vmatmul.msk.f32.vlgmr.msra.gmra.mxu0 %vm2440_vm4, %v3001_v43  ;;  %3817 = vmatmul.msk.f32.vlgmr.msra.gmra.mxu1 %vm2440_vm4, %v3024_v44 }
 0x165   : > { %3063 = vmatpush.msra.mxu2 %v3626_v36  ;;  %3086 = vmatpush.msra.mxu3 %v3626_v36 }
 0x166   : > { %3108 = vmatpush.msrb.mxu0 %v3627_v35  ;;  %3131 = vmatpush.msrb.mxu1 %v3627_v35 }
 0x167   : > { %3064 = vmatpush.msra.mxu2 %v3625_v38  ;;  %3087 = vmatpush.msra.mxu3 %v3625_v38 }
 0x168   : > { %3109 = vmatpush.msrb.mxu0 %v3626_v36  ;;  %3132 = vmatpush.msrb.mxu1 %v3626_v36 }
 0x169   : > { %3065 = vmatpush.msra.mxu2 %v3624_v42  ;;  %3088 = vmatpush.msra.mxu3 %v3624_v42 }
 0x16a   : > { %3110 = vmatpush.msrb.mxu0 %v3625_v38  ;;  %3133 = vmatpush.msrb.mxu1 %v3625_v38 }
 0x16b   : > { %3818 = vmatmul.msk.f32.vlgmr.msra.gmra.mxu2 %vm2440_vm4, %v3047_v45  ;;  %3819 = vmatmul.msk.f32.vlgmr.msra.gmra.mxu3 %vm2440_vm4, %v3070_v48 }
 0x16c   : > { %3154 = vmatpush.msrb.mxu2 %v3627_v35  ;;  %3111 = vmatpush.msrb.mxu0 %v3624_v42 }
 0x16d   : > { %3134 = vmatpush.msrb.mxu1 %v3624_v42  ;;  %3177 = vmatpush.msrb.mxu3 %v3627_v35 }
 0x16e   : > { %3820 = vmatmul.msk.f32.vlgmr.msrb.gmra.mxu0 %vm2440_vm4, %v3093_v49  ;;  %3821 = vmatmul.msk.f32.vlgmr.msrb.gmra.mxu1 %vm2440_vm4, %v3116_v50  ;;  %v4680_v49 = vld [vmem:[%s4725_s8] sm:$0xf] }
 0x16f   : > { %3155 = vmatpush.msrb.mxu2 %v3626_v36  ;;  %3178 = vmatpush.msrb.mxu3 %v3626_v36 }
 0x170   : > { %3208 = vmatpush.msra.mxu0 %v3631_v51  ;;  %3231 = vmatpush.msra.mxu1 %v3631_v51 }
 0x171   : > { %3156 = vmatpush.msrb.mxu2 %v3625_v38  ;;  %3179 = vmatpush.msrb.mxu3 %v3625_v38 }
 0x172   : > { %3209 = vmatpush.msra.mxu0 %v3630_v52  ;;  %3232 = vmatpush.msra.mxu1 %v3630_v52 }
 0x173   : > { %3157 = vmatpush.msrb.mxu2 %v3624_v42  ;;  %3180 = vmatpush.msrb.mxu3 %v3624_v42 }
 0x174   : > { %3210 = vmatpush.msra.mxu0 %v3629_v53  ;;  %3233 = vmatpush.msra.mxu1 %v3629_v53 }
 0x175   : > { %3822 = vmatmul.msk.f32.vlgmr.msrb.gmra.mxu2 %vm2440_vm4, %v3139_v54  ;;  %3823 = vmatmul.msk.f32.vlgmr.msrb.gmra.mxu3 %vm2440_vm4, %v3162_v39 }
 0x176   : > { %3254 = vmatpush.msra.mxu2 %v3631_v51  ;;  %3211 = vmatpush.msra.mxu0 %v3628_v46 }
 0x177   : > { %3234 = vmatpush.msra.mxu1 %v3628_v46  ;;  %3277 = vmatpush.msra.mxu3 %v3631_v51 }
 0x178   : > { %3824 = vmatmul.msk.f32.vlgmr.msra.gmra.mxu0 %vm2440_vm4, %v3193_v37  ;;  %3825 = vmatmul.msk.f32.vlgmr.msra.gmra.mxu1 %vm2440_vm4, %v3216_v47 }
 0x179   : > { %3255 = vmatpush.msra.mxu2 %v3630_v52  ;;  %3278 = vmatpush.msra.mxu3 %v3630_v52 }
 0x17a   : > { %3300 = vmatpush.msrb.mxu0 %v3631_v51  ;;  %3323 = vmatpush.msrb.mxu1 %v3631_v51 }
 0x17b   : > { %3256 = vmatpush.msra.mxu2 %v3629_v53  ;;  %3279 = vmatpush.msra.mxu3 %v3629_v53 }
 0x17c   : > { %3301 = vmatpush.msrb.mxu0 %v3630_v52  ;;  %3324 = vmatpush.msrb.mxu1 %v3630_v52 }
 0x17d   : > { %3257 = vmatpush.msra.mxu2 %v3628_v46  ;;  %3280 = vmatpush.msra.mxu3 %v3628_v46 }
 0x17e   : > { %3302 = vmatpush.msrb.mxu0 %v3629_v53  ;;  %3325 = vmatpush.msrb.mxu1 %v3629_v53 }
 0x17f   : > { %3826 = vmatmul.msk.f32.vlgmr.msra.gmra.mxu2 %vm2440_vm4, %v3239_v55  ;;  %3827 = vmatmul.msk.f32.vlgmr.msra.gmra.mxu3 %vm2440_vm4, %v3262_v60 }
 0x180   : > { %3303 = vmatpush.msrb.mxu0 %v3628_v46  ;;  %3326 = vmatpush.msrb.mxu1 %v3628_v46 }
 0x181   : > { %3346 = vmatpush.msrb.mxu2 %v3631_v51  ;;  %3369 = vmatpush.msrb.mxu3 %v3631_v51 }
 0x182   : > { %3828 = vmatmul.msk.f32.vlgmr.msrb.gmra.mxu0 %vm2440_vm4, %v3285_v58  ;;  %3829 = vmatmul.msk.f32.vlgmr.msrb.gmra.mxu1 %vm2440_vm4, %v3308_v61 }
 0x183   : > { %3347 = vmatpush.msrb.mxu2 %v3630_v52  ;;  %3370 = vmatpush.msrb.mxu3 %v3630_v52 }
 0x185   : > { %3348 = vmatpush.msrb.mxu2 %v3629_v53  ;;  %3371 = vmatpush.msrb.mxu3 %v3629_v53 }
 0x187   : > { %3349 = vmatpush.msrb.mxu2 %v3628_v46  ;;  %3372 = vmatpush.msrb.mxu3 %v3628_v46 }
 0x188   : > { %3830 = vmatmul.msk.f32.vlgmr.msrb.gmra.mxu2 %vm2440_vm4, %v3331_v0  ;;  %3831 = vmatmul.msk.f32.vlgmr.msrb.gmra.mxu3 %vm2440_vm4, %v3354_v59 }
 0x1ad   : > { %v2461_v1 = vpop.f32.mrf.mxu0 }
 0x1ae   : > { %v2484_v56 = vpop.f32.mrf.mxu1 }
 0x1b6   : > { %v2553_v57 = vpop.f32.mrf.mxu0 }
 0x1b7   : > { %v2576_v2 = vpop.f32.mrf.mxu1 }
 0x1ba   : > { %v2507_v3 = vpop.f32.mrf.mxu2 }
 0x1bb   : > { %v2530_v4 = vpop.f32.mrf.mxu3 }
 0x1be   : > { %v2645_v5 = vpop.f32.mrf.mxu0 }
 0x1bf   : > { %v2668_v6 = vpop.f32.mrf.mxu1  ;;  %v2646_v21 = vadd.f32 %v2645_v5, %v2461_v1 }
 0x1c0   : > { %v2669_v22 = vadd.f32 %v2668_v6, %v2484_v56 }
 0x1c2   : > { %v4662_v7 = vpop.f32.mrf.mxu2 }
 0x1c3   : > { %v4664_v8 = vpop.f32.mrf.mxu3 }
 0x1c6   : > { %v2737_v9 = vpop.f32.mrf.mxu0 }
 0x1c7   : > { %v2760_v10 = vpop.f32.mrf.mxu1  ;;  %v2738_v44 = vadd.f32 %v2737_v9, %v2553_v57 }
 0x1c8   : > { %v2761_v45 = vadd.f32 %v2760_v10, %v2576_v2 }
 0x1ca   : > { %v2691_v11 = vpop.f32.mrf.mxu2 }
 0x1cb   : > { %v2714_v14 = vpop.f32.mrf.mxu3  ;;  %v2692_v54 = vadd.f32 %v2691_v11, %v2507_v3 }
 0x1cc   : > { %v2715_v39 = vadd.f32 %v2714_v14, %v2530_v4 }
 0x1ce   : > { %v2829_v15 = vpop.f32.mrf.mxu0 }
 0x1cf   : > { %v2852_v16 = vpop.f32.mrf.mxu1  ;;  %v2993_v29 = vadd.f32 %v2829_v15, %v2646_v21 }
 0x1d0   : > { %v2994_v30 = vadd.f32 %v2852_v16, %v2669_v22 }
 0x1d2   : > { %v4666_v17 = vpop.f32.mrf.mxu2 }
 0x1d3   : > { %v4668_v62 = vpop.f32.mrf.mxu3 }
 0x1d7   : > { %v2921_v12 = vpop.f32.mrf.mxu0  ;;  %v2944_v18 = vpop.f32.mrf.mxu1 }
 0x1d8   : > { %v2997_v50 = vadd.f32 %v2921_v12, %v2738_v44  ;;  %v2998_v51 = vadd.f32 %v2944_v18, %v2761_v45  ;;  %v2784_v12 = vadd.f32 %v4666_v17, %v4662_v7  ;;  %v2807_v18 = vadd.f32 %v4668_v62, %v4664_v8 }
 0x1da   : > { %v2875_v63 = vpop.f32.mrf.mxu2 }
 0x1db   : > { %v2898_v13 = vpop.f32.mrf.mxu3  ;;  %v2995_v55 = vadd.f32 %v2875_v63, %v2692_v54 }
 0x1dc   : > { %v2996_v60 = vadd.f32 %v2898_v13, %v2715_v39 }
 0x1e1   : > { %v3021_v19 = vpop.f32.mrf.mxu0  ;;  %v3044_v20 = vpop.f32.mrf.mxu1 }
 0x1e2   : > { %v3185_v31 = vadd.f32 %v3021_v19, %v2993_v29  ;;  %v3186_v32 = vadd.f32 %v3044_v20, %v2994_v30 }
 0x1e4   : > { %v2967_v23 = vpop.f32.mrf.mxu2  ;;  %v2990_v24 = vpop.f32.mrf.mxu3 }
 0x1e5   : > { %v2999_v20 = vadd.f32 %v2967_v23, %v2784_v12 }
 0x1eb   : > { %v3113_v25 = vpop.f32.mrf.mxu0  ;;  %v3136_v26 = vpop.f32.mrf.mxu1 }
 0x1ec   : > { %v3189_v46 = vadd.f32 %v3113_v25, %v2997_v50  ;;  %v3190_v37 = vadd.f32 %v3136_v26, %v2998_v51  ;;  %v3000_v25 = vadd.f32 %v2990_v24, %v2807_v18 }
 0x1ee   : > { %v3067_v27 = vpop.f32.mrf.mxu2  ;;  %v3090_v28 = vpop.f32.mrf.mxu3 }
 0x1ef   : > { %v3187_v57 = vadd.f32 %v3067_v27, %v2995_v55  ;;  %v3188_v2 = vadd.f32 %v3090_v28, %v2996_v60 }
 0x1f5   : > { %v3213_v34 = vpop.f32.mrf.mxu0  ;;  %v3236_v35 = vpop.f32.mrf.mxu1 }
 0x1f6   : > { %v3377_v36 = vadd.f32 %v3213_v34, %v3185_v31  ;;  %v3378_v38 = vadd.f32 %v3236_v35, %v3186_v32 }
 0x1f8   : > { %v3389_v40 = vadd.f32 %v4673_v33, %v3377_v36  ;;  %v3390_v41 = vadd.f32 %v4673_v33, %v3378_v38  ;;  %v3159_v42 = vpop.f32.mrf.mxu2  ;;  %v3182_v43 = vpop.f32.mrf.mxu3 }
 0x1f9   : > { %v3191_v22 = vadd.f32 %v3159_v42, %v2999_v20  ;;  %v3192_v29 = vadd.f32 %v3182_v43, %v3000_v25 }
 0x1fa   : > { %v3397_v48 = vmul.f32 0.2, %v3389_v40  ;;  %v3398_v52 = vmul.f32 0.2, %v3390_v41 }
 0x1fc   : > { %v3405_v53 = vmax.f32 %v3389_v40, %v3397_v48  ;;  %v3406_v56 = vmax.f32 %v3390_v41, %v3398_v52 }
 0x1fe   : > { %v3414_v47 = vmul.f32 %v4680_v49, %v3405_v53  ;;  %v3415_v14 = vmul.f32 %v4680_v49, %v3406_v56  ;;  %v3455_v53 = vlaneseq }
 0x1ff   : > { %v3305_v58 = vpop.f32.mrf.mxu0  ;;  %v3328_v61 = vpop.f32.mrf.mxu1 }
 0x200   : > { %v3381_v0 = vadd.f32 %v3305_v58, %v3189_v46  ;;  %v3382_v59 = vadd.f32 %v3328_v61, %v3190_v37  ;;  %v3423_v1 = vsel %vm3422_vm5, %v3414_v47, 0.0  ;;  %v3426_v27 = vsel %vm3422_vm5, %v3415_v14, 0.0 }
 0x201   : > { %3424 = vadd.xlane.f32.xlu0 %v3423_v1  ;;  %v3456_v37 = vand.u32 127, %v3455_v53 }
 0x202   : > { %v3393_v3 = vadd.f32 %v4673_v33, %v3381_v0  ;;  %v3394_v4 = vadd.f32 %v4673_v33, %v3382_v59  ;;  %v3259_v5 = vpop.f32.mrf.mxu2  ;;  %v3282_v6 = vpop.f32.mrf.mxu3 }
 0x203   : > { %v3379_v9 = vadd.f32 %v3259_v5, %v3187_v57  ;;  %v3380_v10 = vadd.f32 %v3282_v6, %v3188_v2 }
 0x204   : > { %v3401_v11 = vmul.f32 0.2, %v3393_v3  ;;  %v3402_v63 = vmul.f32 0.2, %v3394_v4 }
 0x205   : > { %v3391_v15 = vadd.f32 %v4673_v33, %v3379_v9  ;;  %v3392_v16 = vadd.f32 %v4673_v33, %v3380_v10 }
 0x206   : > { %v3409_v13 = vmax.f32 %v3393_v3, %v3401_v11  ;;  %v3410_v7 = vmax.f32 %v3394_v4, %v3402_v63 }
 0x207   : > { %v3399_v19 = vmul.f32 0.2, %v3391_v15  ;;  %v3400_v28 = vmul.f32 0.2, %v3392_v16 }
 0x208   : > { %v3418_v26 = vmul.f32 %v4680_v49, %v3409_v13  ;;  %v3419_v36 = vmul.f32 %v4680_v49, %v3410_v7 }
 0x209   : > { %3427 = vadd.xlane.f32.xlu0 %v3426_v27  ;;  %v3407_v21 = vmax.f32 %v3391_v15, %v3399_v19  ;;  %v3408_v32 = vmax.f32 %v3392_v16, %v3400_v28  ;;  %v3846_v15 = vld [vmem:[#allocation4] ss:$0 sm:$0xff] }
 0x20a   : > { %v3435_v30 = vsel %vm3422_vm5, %v3418_v26, 0.0  ;;  %v3438_v42 = vsel %vm3422_vm5, %v3419_v36, 0.0 }
 0x20b   : > { %v3351_v17 = vpop.f32.mrf.mxu2  ;;  %v3374_v31 = vpop.f32.mrf.mxu3  ;;  %3436 = vadd.xlane.f32.xlu2 %v3435_v30  ;;  %v3416_v8 = vmul.f32 %v4680_v49, %v3407_v21  ;;  %v3417_v41 = vmul.f32 %v4680_v49, %v3408_v32 }
 0x20c   : > { %v3383_v62 = vadd.f32 %v3351_v17, %v3191_v22  ;;  %v3384_v23 = vadd.f32 %v3374_v31, %v3192_v29 }
 0x20d   : > { %v3429_v24 = vsel %vm3422_vm5, %v3416_v8, 0.0  ;;  %v3432_v45 = vsel %vm3422_vm5, %v3417_v41, 0.0 }
 0x20e   : > { %v3395_v34 = vadd.f32 %v4673_v33, %v3383_v62  ;;  %v3396_v35 = vadd.f32 %v4673_v33, %v3384_v23  ;;  %3430 = vadd.xlane.f32.xlu1 %v3429_v24 }
 0x210   : > { %v3403_v38 = vmul.f32 0.2, %v3395_v34  ;;  %v3404_v40 = vmul.f32 0.2, %v3396_v35 }
 0x212   : > { %v3411_v43 = vmax.f32 %v3395_v34, %v3403_v38  ;;  %v3412_v48 = vmax.f32 %v3396_v35, %v3404_v40 }
 0x213   : > { %3439 = vadd.xlane.f32.xlu2 %v3438_v42 }
 0x214   : > { %v3420_v44 = vmul.f32 %v4680_v49, %v3411_v43  ;;  %v3421_v33 = vmul.f32 %v4680_v49, %v3412_v48 }
 0x216   : > { %3433 = vadd.xlane.f32.xlu1 %v3432_v45  ;;  %v3441_v50 = vsel %vm3422_vm5, %v3420_v44, 0.0  ;;  %v3444_v51 = vsel %vm3422_vm5, %v3421_v33, 0.0 }
 0x217   : > { %3442 = vadd.xlane.f32.xlu0 %v3441_v50 }
 0x21e   : > { %3445 = vadd.xlane.f32.xlu1 %v3444_v51 }
 0x274   : > { %v3425_v52 = vpop.xlane.xlu0 %3424 }
 0x275   : > { %v3457_v60 = vperm.slane %v3425_v52, %v3456_v37 }
 0x27c   : > { %v3428_v46 = vpop.xlane.xlu0 %3427 }
 0x27d   : > { %v3458_v47 = vperm.slane %v3428_v46, %v3456_v37 }
 0x27e   : > { %v3437_v54 = vpop.xlane.xlu2 %3436 }
 0x27f   : > { %v3466_v61 = vsel %vm3465_vm6, %v3458_v47, %v3457_v60  ;;  %v3461_v49 = vperm.slane %v3437_v54, %v3456_v37 }
 0x281   : > { %v3431_v39 = vpop.xlane.xlu1 %3430 }
 0x282   : > { %v3459_v55 = vperm.slane %v3431_v39, %v3456_v37 }
 0x284   : > { %v3468_v59 = vsel %vm3467_vm7, %v3459_v55, %v3466_v61 }
 0x286   : > { %v3440_v1 = vpop.xlane.xlu2 %3439 }
 0x287   : > { %v3462_v2 = vperm.slane %v3440_v1, %v3456_v37 }
 0x289   : > { %v3434_v58 = vpop.xlane.xlu1 %3433 }
 0x28a   : > { %v3460_v0 = vperm.slane %v3434_v58, %v3456_v37  ;;  %v3443_v3 = vpop.xlane.xlu0 %3442 }
 0x28b   : > { %v3463_v5 = vperm.slane %v3443_v3, %v3456_v37 }
 0x28c   : > { %v3470_v56 = vsel %vm3469_vm8, %v3460_v0, %v3468_v59 }
 0x28d   : > { %v3472_v57 = vsel %vm3471_vm9, %v3461_v49, %v3470_v56 }
 0x28e   : > { %v3474_v4 = vsel %vm3473_vm10, %v3462_v2, %v3472_v57 }
 0x28f   : > { %v3476_v10 = vsel %vm3475_vm11, %v3463_v5, %v3474_v4 }
 0x291   : > { %v3446_v6 = vpop.xlane.xlu1 %3445 }
 0x292   : > { %v3464_v9 = vperm.slane %v3446_v6, %v3456_v37 }
 0x294   : > { %v3478_v11 = vsel %vm3477_vm12, %v3464_v9, %v3476_v10 }
 0x295   : > { %v3480_v14 = vsel %vm493_vm1, %v3478_v11, 0.0 }
 0x296   : > { %3481 = vadd.xlane.f32.xlu2 %v3480_v14 }
 0x309   : > { %v3482_v16 = vpop.xlane.xlu2 %3481 }
 0x30a   : > { %v3487_v12 = vadd.f32 %v3846_v15, %v3482_v16 }
 0x30c   : > { %v3488_v18 = vsub.f32 0.0, %v3487_v12 }
 0x30e   : > { %v3489_v63 = vmul.f32 1.442695, %v3488_v18 }
 0x310   : > { %3847 = vpow2.f32 %v3489_v63 }
 0x316   : > { %v3848_v13 = vpop.eup %3847 }
 0x317   : > { %v3491_v19 = vadd.f32 1.0, %v3848_v13 }
 0x319   : > { %3849 = vrcp.f32 %v3491_v19  ;;  %v3503_v27 = vand.u32 2147483648, %v3491_v19  ;;  %v3501_v21 = vand.u32 2147483647, %v3491_v19  ;;  %vm3497_vm14 = vweird.f32 %v3491_v19 }
 0x31b   : > { %v3504_v29 = vor.u32 1.1754944e-38, %v3503_v27  ;;  %vm3502_vm1 = vcmp.eq.f32.partialorder %v3501_v21, 8.507059e+37 }
 0x31f   : > { %v3850_v20 = vpop.eup %3849 }
 0x320   : > { %v3493_v25 = vmul.f32 %v3850_v20, %v3491_v19  ;;  %vm3498_vm13 = vweird.f32 %v3850_v20 }
 0x321   : > { %vm3499_vm0 = vmor %vm3497_vm14, %vm3498_vm13 }
 0x322   : > { %v3494_v26 = vsub.f32 1.0, %v3493_v25 }
 0x324   : > { %v3495_v28 = vmul.f32 %v3850_v20, %v3494_v26 }
 0x326   : > { %v3496_v22 = vadd.f32 %v3850_v20, %v3495_v28 }
 0x328   : > { %v3500_v30 = vsel %vm3499_vm0, %v3850_v20, %v3496_v22 }
 0x329   : > { %v3505_v7 = vsel %vm3502_vm1, %v3504_v29, %v3500_v30 }
 0x32a   : > { %3508 = vst.msk [vmem:[%s427_s14] sm:$0xff] %vm3507_vm15, %v3505_v7 }
 0x32b PF: > { %s22_s15 = sadd.s32 1, %s3857_s15  }
 0x32c   : > { %p19_p5 = scmp.ge.s32.totalorder %s22_s15, 4  }
 0x32e   :  { %21 = sbr.rel (!%p19_p5) target bundleno = 3 (0x3), region = 107 }

</bundles_post_ra>
